<compile_context>
chip_gen: v6e
topology: v6e:2x2x1
jax: 0.10.0
libtpu: 0.0.40
codegen_flags: <defaults>
</compile_context>

<pallas_src>
import jax
import jax.numpy as jnp
from jax.experimental import pallas as pl
from jax.experimental.pallas import tpu as pltpu

NODE_DIM = 16   # node feature dim
ATTN_DIM = 32   # attention dim
TILE_E_MAX = 512


def _round_up(v, m):
    return (v + m - 1) // m * m


def _node_attention_kernel(xT_ref, wT_ref, src_ref, dst_ref, out_ref,
                           qk_ref, m_ref, l_ref):
    phase = pl.program_id(0)
    et = pl.program_id(1)

    a_dim = qk_ref.shape[0] // 2
    n_pad = qk_ref.shape[1]
    tile_e = src_ref.shape[1]
    neg_big = jnp.float32(-1e30)

    @pl.when(jnp.logical_and(phase == 0, et == 0))
    def _init():
        # Fused Q/K projection, bias folded into the contraction (ones row in x^T,
        # bias column in W^T):  qk^T [2A, N_pad] = W_aug^T [2A, Dc] @ x_aug^T [Dc, N_pad].
        qk_ref[...] = jnp.dot(wT_ref[...], xT_ref[...],
                              preferred_element_type=jnp.float32)
        m_ref[...] = jnp.full_like(m_ref, neg_big)
        l_ref[...] = jnp.zeros_like(l_ref)

    qT = qk_ref[:a_dim, :]          # [A, N_pad]  (sublane-aligned static slices)
    kT = qk_ref[a_dim:, :]          # [A, N_pad]

    # One-hot edge->node selectors: nodes on sublanes, edges on lanes (lane-dense).
    node_iota = jax.lax.broadcasted_iota(jnp.int32, (n_pad, tile_e), 0)
    src_hit = node_iota == src_ref[...]                 # padded edges (src=-1): no hit
    src_oh = src_hit.astype(jnp.float32)                # [N_pad, tile_e]
    dst_oh = (node_iota == dst_ref[...]).astype(jnp.float32)

    # Row gathers q[src], k[dst] as one-hot MXU matmuls -> [A, tile_e].
    src_q = jnp.dot(qT, src_oh, preferred_element_type=jnp.float32)
    dst_k = jnp.dot(kT, dst_oh, preferred_element_type=jnp.float32)
    # Per-edge scores via an MXU feature reduction -> [1, tile_e] (lane-dense row).
    scores = jnp.dot(jnp.ones((1, a_dim), jnp.float32), src_q * dst_k,
                     preferred_element_type=jnp.float32)

    # dot_general dimension numbers:
    #   TN: contract sublane (node) dims of both  -> node->edge broadcast  m^T @ src_oh
    #   NT: contract lane (edge) dims of both     -> edge->node segment sum
    tn = (((0,), (0,)), ((), ()))
    nt = (((1,), (1,)), ((), ()))

    @pl.when(phase == 0)
    def _accumulate():
        # Online softmax accumulation of per-node running max / sum-of-exp.
        masked = jnp.where(src_hit, scores, neg_big)                    # [N_pad, tile_e]
        m_old = m_ref[...]                                              # [N_pad, 1]
        m_new = jnp.maximum(m_old, jnp.max(masked, axis=1, keepdims=True))
        # Broadcast node max -> edges on the MXU: [1, tile_e].
        edge_m = jax.lax.dot_general(m_new, src_oh, tn,
                                     preferred_element_type=jnp.float32)
        p = jnp.exp(scores - edge_m)                                    # [1, tile_e]
        # Segment sum edges -> nodes on the MXU: [N_pad, 1].
        tile_sum = jax.lax.dot_general(src_oh, p, nt,
                                       preferred_element_type=jnp.float32)
        l_ref[...] = l_ref[...] * jnp.exp(m_old - m_new) + tile_sum
        m_ref[...] = m_new
        out_ref[...] = jnp.zeros_like(out_ref)      # phase-1 revisit overwrites

    @pl.when(phase == 1)
    def _normalize():
        edge_m = jax.lax.dot_general(m_ref[...], src_oh, tn,
                                     preferred_element_type=jnp.float32)
        edge_den = jax.lax.dot_general(l_ref[...], src_oh, tn,
                                       preferred_element_type=jnp.float32)
        p = jnp.exp(scores - edge_m)
        den_ok = edge_den > 0.0                     # padded edges / edge-less nodes
        inv = pl.reciprocal(jnp.where(den_ok, edge_den, 1.0), approx=True)
        out_ref[...] = jnp.where(den_ok, p * inv, 0.0).astype(out_ref.dtype)


@jax.jit
def node_attention_forward(x, edge_index, wq, bq, wk, bk):
    """NodeAttention.forward. x: [N, node_dim], edge_index: [2, E]. Returns (x, attn[E])."""
    N, D = x.shape
    E = edge_index.shape[1]
    A = wq.shape[1]

    # Nodes -> 128-deep one-hot contraction (v5e-full; use 256 slabs on v6e/v7x for big N).
    n_pad = _round_up(max(N, 1), 128)
    tile_e = min(TILE_E_MAX, _round_up(max(E, 1), 128))
    e_pad = _round_up(max(E, 1), tile_e)
    dc = _round_up(D + 1, 8)                        # +1 row of ones for the folded bias

    # Transposed, padded node features with a ones row (bias folding): [Dc, N_pad].
    xT_aug = jnp.zeros((dc, n_pad), jnp.float32)
    xT_aug = xT_aug.at[:D, :N].set(x.T.astype(jnp.float32))
    xT_aug = xT_aug.at[D, :].set(1.0)               # padded node cols never referenced

    # Fused Q/K weight with biases as an extra contraction column: [2A, Dc].
    w_qk = jnp.concatenate([wq, wk], axis=1).astype(jnp.float32)        # [D, 2A]
    b_qk = jnp.concatenate([bq, bk], axis=0).astype(jnp.float32)        # [2A]
    wT_aug = jnp.zeros((2 * A, dc), jnp.float32)
    wT_aug = wT_aug.at[:, :D].set(w_qk.T).at[:, D].set(b_qk)

    # Edge endpoints, -1 padded (matches no node -> padded edges drop out).
    src = jnp.full((1, e_pad), -1, jnp.int32).at[0, :E].set(edge_index[0].astype(jnp.int32))
    dst = jnp.full((1, e_pad), -1, jnp.int32).at[0, :E].set(edge_index[1].astype(jnp.int32))

    const_spec = lambda shape: pl.BlockSpec(shape, lambda ph, et: (0, 0))
    edge_spec = pl.BlockSpec((1, tile_e), lambda ph, et: (0, et))

    attn = pl.pallas_call(
        _node_attention_kernel,
        out_shape=jax.ShapeDtypeStruct((1, e_pad), jnp.float32),
        grid_spec=pltpu.PrefetchScalarGridSpec(
            num_scalar_prefetch=0,
            grid=(2, e_pad // tile_e),              # (phase, edge tile)
            in_specs=[const_spec((dc, n_pad)),      # x^T (+ ones row)
                      const_spec((2 * A, dc)),      # W^T (+ bias col)
                      edge_spec,                    # src
                      edge_spec],                   # dst
            out_specs=edge_spec,
            scratch_shapes=[pltpu.VMEM((2 * A, n_pad), jnp.float32),   # q^T / k^T
                            pltpu.VMEM((n_pad, 1), jnp.float32),       # running max
                            pltpu.VMEM((n_pad, 1), jnp.float32)],      # running sum
        ),
        compiler_params=pltpu.CompilerParams(
            dimension_semantics=("arbitrary", "arbitrary"),
            vmem_limit_bytes=32 * 1024 * 1024,
        ),
    )(xT_aug, wT_aug, src, dst)

    return x, attn[0, :E]


def reference_forward(x, edge_index, wq, bq, wk, bk):
    """Pure-JAX reference of NodeAttention.forward (torch_scatter.scatter_softmax)."""
    q = x @ wq + bq
    k = x @ wk + bk
    src, dst = edge_index[0], edge_index[1]
    scores = jnp.sum(q[src] * k[dst], axis=1)
    N = x.shape[0]
    maxs = jax.ops.segment_max(scores, src, num_segments=N)
    p = jnp.exp(scores - maxs[src])
    sums = jax.ops.segment_sum(p, src, num_segments=N)
    return x, p / sums[src]


if __name__ == "__main__":
    key = jax.random.PRNGKey(0)
    kx, ke, kq, kk, kbq, kbk = jax.random.split(key, 6)

    N, E = 16, 64
    x = jax.random.normal(kx, (N, NODE_DIM), jnp.float32)
    edge_index = jax.random.randint(ke, (2, E), 0, N, dtype=jnp.int32)

    bound = 1.0 / (NODE_DIM ** 0.5)
    # Stored as [in, out] so math is x @ W (PyTorch nn.Linear stores [out, in]).
    wq = jax.random.uniform(kq, (NODE_DIM, ATTN_DIM), jnp.float32, -bound, bound)
    wk = jax.random.uniform(kk, (NODE_DIM, ATTN_DIM), jnp.float32, -bound, bound)
    bq = jax.random.uniform(kbq, (ATTN_DIM,), jnp.float32, -bound, bound)
    bk = jax.random.uniform(kbk, (ATTN_DIM,), jnp.float32, -bound, bound)

    x_out, attn = node_attention_forward(x, edge_index, wq, bq, wk, bk)
    attn = jax.block_until_ready(attn)

    x_ref, attn_ref = reference_forward(x, edge_index, wq, bq, wk, bk)
    assert x_out.shape == (N, NODE_DIM) and attn.shape == (E,)
    assert jnp.allclose(x_out, x_ref), "x passthrough mismatch"
    # approx reciprocal (EUP) -> slightly looser tolerance than exact divide.
    assert jnp.allclose(attn, attn_ref, atol=2e-3, rtol=2e-3), "attn mismatch vs reference"

    print("KERNEL_OK")
</pallas_src>

<mosaic_0001>
module attributes {stable_mosaic.version = 11 : i64} {
  func.func @_node_attention_kernel(%arg0: i32, %arg1: i32, %arg2: memref<24x128xf32, #tpu.memory_space<vmem>>, %arg3: memref<64x24xf32, #tpu.memory_space<vmem>>, %arg4: memref<1x128xi32, #tpu.memory_space<vmem>>, %arg5: memref<1x128xi32, #tpu.memory_space<vmem>>, %arg6: memref<1x128xf32, #tpu.memory_space<vmem>>, %arg7: memref<64x128xf32, #tpu.memory_space<vmem>>, %arg8: memref<128x1xf32, #tpu.memory_space<vmem>>, %arg9: memref<128x1xf32, #tpu.memory_space<vmem>>) attributes {dimension_semantics = [#tpu.dimension_semantics<arbitrary>, #tpu.dimension_semantics<arbitrary>], iteration_bounds = array<i64: 2, 1>, scalar_prefetch = 0 : i64, scratch_operands = 3 : i64, tpu.core_type = #tpu.core_type<tc>, window_params = [{pipeline_mode = #tpu.pipeline_mode<synchronous>, transform_indices = @transform_0, window_bounds = array<i64: 24, 128>}, {pipeline_mode = #tpu.pipeline_mode<synchronous>, transform_indices = @transform_1, window_bounds = array<i64: 64, 24>}, {transform_indices = @transform_2, window_bounds = array<i64: 1, 128>}, {transform_indices = @transform_3, window_bounds = array<i64: 1, 128>}, {transform_indices = @transform_4, window_bounds = array<i64: 1, 128>}]} {
    %c0_i32 = arith.constant 0 : i32
    %0 = arith.cmpi eq, %arg0, %c0_i32 : i32
    %c0_i32_0 = arith.constant 0 : i32
    %1 = arith.cmpi eq, %arg1, %c0_i32_0 : i32
    %2 = arith.andi %0, %1 : i1
    %3 = arith.extui %2 : i1 to i32
    %cst = arith.constant -1.000000e+30 : f32
    %c0_i32_1 = arith.constant 0 : i32
    %4 = arith.cmpi ne, %3, %c0_i32_1 : i32
    scf.if %4 {
      %c0_16 = arith.constant 0 : index
      %c0_17 = arith.constant 0 : index
      %29 = vector.load %arg3[%c0_16, %c0_17] : memref<64x24xf32, #tpu.memory_space<vmem>>, vector<64x24xf32>
      %c0_18 = arith.constant 0 : index
      %c0_19 = arith.constant 0 : index
      %30 = vector.load %arg2[%c0_18, %c0_19] : memref<24x128xf32, #tpu.memory_space<vmem>>, vector<24x128xf32>
      %cst_20 = arith.constant dense<0.000000e+00> : vector<64x128xf32>
      %31 = tpu.matmul %29, %30, %cst_20 {dimension_numbers = #tpu.dot_dimension_numbers<[1], [0], [0], [1], [0, 0, 1, 1], [], []>} : vector<64x24xf32>, vector<24x128xf32>, vector<64x128xf32> -> vector<64x128xf32>
      %c0_21 = arith.constant 0 : index
      %c0_22 = arith.constant 0 : index
      %32 = vector.load %arg7[%c0_21, %c0_22] : memref<64x128xf32, #tpu.memory_space<vmem>>, vector<64x128xf32>
      tpu.vector_store %arg7[%c0_21, %c0_22], %31 {strides = array<i32>} : memref<64x128xf32, #tpu.memory_space<vmem>>, vector<64x128xf32>,
      %33 = vector.broadcast %cst : f32 to vector<128x1xf32>
      %c0_23 = arith.constant 0 : index
      %c0_24 = arith.constant 0 : index
      %34 = vector.load %arg8[%c0_23, %c0_24] : memref<128x1xf32, #tpu.memory_space<vmem>>, vector<128x1xf32>
      tpu.vector_store %arg8[%c0_23, %c0_24], %33 {strides = array<i32>} : memref<128x1xf32, #tpu.memory_space<vmem>>, vector<128x1xf32>,
      %cst_25 = arith.constant 0.000000e+00 : f32
      %35 = vector.broadcast %cst_25 : f32 to vector<128x1xf32>
      %c0_26 = arith.constant 0 : index
      %c0_27 = arith.constant 0 : index
      %36 = vector.load %arg9[%c0_26, %c0_27] : memref<128x1xf32, #tpu.memory_space<vmem>>, vector<128x1xf32>
      tpu.vector_store %arg9[%c0_26, %c0_27], %35 {strides = array<i32>} : memref<128x1xf32, #tpu.memory_space<vmem>>, vector<128x1xf32>,
    } else {
    }
    %c0 = arith.constant 0 : index
    %c0_2 = arith.constant 0 : index
    %5 = vector.load %arg7[%c0, %c0_2] : memref<64x128xf32, #tpu.memory_space<vmem>>, vector<32x128xf32>
    %c32 = arith.constant 32 : index
    %c0_3 = arith.constant 0 : index
    %6 = vector.load %arg7[%c32, %c0_3] : memref<64x128xf32, #tpu.memory_space<vmem>>, vector<32x128xf32>
    %7 = tpu.iota {dimensions = array<i32: 0>} : vector<128x128xi32>
    %c0_4 = arith.constant 0 : index
    %c0_5 = arith.constant 0 : index
    %8 = vector.load %arg4[%c0_4, %c0_5] : memref<1x128xi32, #tpu.memory_space<vmem>>, vector<1x128xi32>
    %9 = vector.broadcast %8 : vector<1x128xi32> to vector<128x128xi32>
    %10 = arith.cmpi eq, %7, %9 : vector<128x128xi32>
    %11 = arith.extui %10 : vector<128x128xi1> to vector<128x128xi32>
    %12 = arith.sitofp %11 : vector<128x128xi32> to vector<128x128xf32>
    %c0_6 = arith.constant 0 : index
    %c0_7 = arith.constant 0 : index
    %13 = vector.load %arg5[%c0_6, %c0_7] : memref<1x128xi32, #tpu.memory_space<vmem>>, vector<1x128xi32>
    %14 = vector.broadcast %13 : vector<1x128xi32> to vector<128x128xi32>
    %15 = arith.cmpi eq, %7, %14 : vector<128x128xi32>
    %16 = arith.extui %15 : vector<128x128xi1> to vector<128x128xi32>
    %17 = arith.sitofp %16 : vector<128x128xi32> to vector<128x128xf32>
    %cst_8 = arith.constant dense<0.000000e+00> : vector<32x128xf32>
    %18 = tpu.matmul %5, %12, %cst_8 {dimension_numbers = #tpu.dot_dimension_numbers<[1], [0], [0], [1], [0, 0, 1, 1], [], []>} : vector<32x128xf32>, vector<128x128xf32>, vector<32x128xf32> -> vector<32x128xf32>
    %cst_9 = arith.constant dense<0.000000e+00> : vector<32x128xf32>
    %19 = tpu.matmul %6, %17, %cst_9 {dimension_numbers = #tpu.dot_dimension_numbers<[1], [0], [0], [1], [0, 0, 1, 1], [], []>} : vector<32x128xf32>, vector<128x128xf32>, vector<32x128xf32> -> vector<32x128xf32>
    %cst_10 = arith.constant 1.000000e+00 : f32
    %20 = vector.broadcast %cst_10 : f32 to vector<1x32xf32>
    %21 = arith.mulf %18, %19 : vector<32x128xf32>
    %cst_11 = arith.constant dense<0.000000e+00> : vector<1x128xf32>
    %22 = tpu.matmul %20, %21, %cst_11 {dimension_numbers = #tpu.dot_dimension_numbers<[1], [0], [0], [1], [0, 0, 1, 1], [], []>} : vector<1x32xf32>, vector<32x128xf32>, vector<1x128xf32> -> vector<1x128xf32>
    %c0_i32_12 = arith.constant 0 : i32
    %23 = arith.cmpi eq, %arg0, %c0_i32_12 : i32
    %24 = arith.extui %23 : i1 to i32
    %cst_13 = arith.constant -1.000000e+30 : f32
    %c0_i32_14 = arith.constant 0 : i32
    %25 = arith.cmpi ne, %24, %c0_i32_14 : i32
    scf.if %25 {
      %29 = vector.shape_cast %22 : vector<1x128xf32> to vector<1x128xf32>
      %30 = vector.broadcast %29 : vector<1x128xf32> to vector<128x128xf32>
      %31 = vector.broadcast %cst_13 : f32 to vector<128x128xf32>
      %32 = arith.select %10, %30, %31 : vector<128x128xi1>, vector<128x128xf32>
      %c0_16 = arith.constant 0 : index
      %c0_17 = arith.constant 0 : index
      %33 = vector.load %arg8[%c0_16, %c0_17] : memref<128x1xf32, #tpu.memory_space<vmem>>, vector<128x1xf32>
      %cst_18 = arith.constant dense<0xFF800000> : vector<128xf32>
      %34 = vector.multi_reduction <maximumf>, %32, %cst_18 [1] : vector<128x128xf32> to vector<128xf32>
      %35 = vector.shape_cast %34 : vector<128xf32> to vector<128x1xf32>
      %36 = arith.maximumf %33, %35 : vector<128x1xf32>
      %cst_19 = arith.constant dense<0.000000e+00> : vector<1x128xf32>
      %37 = tpu.matmul %36, %12, %cst_19 {dimension_numbers = #tpu.dot_dimension_numbers<[0], [0], [1], [1], [0, 1, 1, 1], [], []>} : vector<128x1xf32>, vector<128x128xf32>, vector<1x128xf32> -> vector<1x128xf32>
      %38 = arith.subf %22, %37 : vector<1x128xf32>
      %39 = math.exp %38 : vector<1x128xf32>
      %cst_20 = arith.constant dense<0.000000e+00> : vector<128x1xf32>
      %40 = tpu.matmul %12, %39, %cst_20 {dimension_numbers = #tpu.dot_dimension_numbers<[1], [1], [0], [0], [0, 0, 1, 0], [], []>} : vector<128x128xf32>, vector<1x128xf32>, vector<128x1xf32> -> vector<128x1xf32>
      %c0_21 = arith.constant 0 : index
      %c0_22 = arith.constant 0 : index
      %41 = vector.load %arg9[%c0_21, %c0_22] : memref<128x1xf32, #tpu.memory_space<vmem>>, vector<128x1xf32>
      %42 = arith.subf %33, %36 : vector<128x1xf32>
      %43 = math.exp %42 : vector<128x1xf32>
      %44 = arith.mulf %41, %43 : vector<128x1xf32>
      %45 = arith.addf %44, %40 : vector<128x1xf32>
      %c0_23 = arith.constant 0 : index
      %c0_24 = arith.constant 0 : index
      %46 = vector.load %arg9[%c0_23, %c0_24] : memref<128x1xf32, #tpu.memory_space<vmem>>, vector<128x1xf32>
      tpu.vector_store %arg9[%c0_23, %c0_24], %45 {strides = array<i32>} : memref<128x1xf32, #tpu.memory_space<vmem>>, vector<128x1xf32>,
      %c0_25 = arith.constant 0 : index
      %c0_26 = arith.constant 0 : index
      %47 = vector.load %arg8[%c0_25, %c0_26] : memref<128x1xf32, #tpu.memory_space<vmem>>, vector<128x1xf32>
      tpu.vector_store %arg8[%c0_25, %c0_26], %36 {strides = array<i32>} : memref<128x1xf32, #tpu.memory_space<vmem>>, vector<128x1xf32>,
      %cst_27 = arith.constant 0.000000e+00 : f32
      %48 = vector.broadcast %cst_27 : f32 to vector<1x128xf32>
      %c0_28 = arith.constant 0 : index
      %c0_29 = arith.constant 0 : index
      %49 = vector.load %arg6[%c0_28, %c0_29] : memref<1x128xf32, #tpu.memory_space<vmem>>, vector<1x128xf32>
      tpu.vector_store %arg6[%c0_28, %c0_29], %48 {strides = array<i32>} : memref<1x128xf32, #tpu.memory_space<vmem>>, vector<1x128xf32>,
    } else {
    }
    %c1_i32 = arith.constant 1 : i32
    %26 = arith.cmpi eq, %arg0, %c1_i32 : i32
    %27 = arith.extui %26 : i1 to i32
    %c0_i32_15 = arith.constant 0 : i32
    %28 = arith.cmpi ne, %27, %c0_i32_15 : i32
    scf.if %28 {
      %c0_16 = arith.constant 0 : index
      %c0_17 = arith.constant 0 : index
      %29 = vector.load %arg8[%c0_16, %c0_17] : memref<128x1xf32, #tpu.memory_space<vmem>>, vector<128x1xf32>
      %cst_18 = arith.constant dense<0.000000e+00> : vector<1x128xf32>
      %30 = tpu.matmul %29, %12, %cst_18 {dimension_numbers = #tpu.dot_dimension_numbers<[0], [0], [1], [1], [0, 1, 1, 1], [], []>} : vector<128x1xf32>, vector<128x128xf32>, vector<1x128xf32> -> vector<1x128xf32>
      %c0_19 = arith.constant 0 : index
      %c0_20 = arith.constant 0 : index
      %31 = vector.load %arg9[%c0_19, %c0_20] : memref<128x1xf32, #tpu.memory_space<vmem>>, vector<128x1xf32>
      %cst_21 = arith.constant dense<0.000000e+00> : vector<1x128xf32>
      %32 = tpu.matmul %31, %12, %cst_21 {dimension_numbers = #tpu.dot_dimension_numbers<[0], [0], [1], [1], [0, 1, 1, 1], [], []>} : vector<128x1xf32>, vector<128x128xf32>, vector<1x128xf32> -> vector<1x128xf32>
      %33 = arith.subf %22, %30 : vector<1x128xf32>
      %34 = math.exp %33 : vector<1x128xf32>
      %cst_22 = arith.constant 0.000000e+00 : f32
      %35 = vector.broadcast %cst_22 : f32 to vector<1x128xf32>
      %36 = arith.cmpf ogt, %32, %35 : vector<1x128xf32>
      %cst_23 = arith.constant 1.000000e+00 : f32
      %37 = vector.broadcast %cst_23 : f32 to vector<1x128xf32>
      %38 = arith.select %36, %32, %37 : vector<1x128xi1>, vector<1x128xf32>
      %39 = tpu.reciprocal %38 {approx = true} : vector<1x128xf32> -> vector<1x128xf32>
      %40 = arith.mulf %34, %39 : vector<1x128xf32>
      %cst_24 = arith.constant 0.000000e+00 : f32
      %41 = vector.broadcast %cst_24 : f32 to vector<1x128xf32>
      %42 = arith.select %36, %40, %41 : vector<1x128xi1>, vector<1x128xf32>
      %c0_25 = arith.constant 0 : index
      %c0_26 = arith.constant 0 : index
      %43 = vector.load %arg6[%c0_25, %c0_26] : memref<1x128xf32, #tpu.memory_space<vmem>>, vector<1x128xf32>
      tpu.vector_store %arg6[%c0_25, %c0_26], %42 {strides = array<i32>} : memref<1x128xf32, #tpu.memory_space<vmem>>, vector<1x128xf32>,
    } else {
    }
    return
  }
  func.func @transform_0(%arg0: i32, %arg1: i32) -> (i32, i32) {
    %c0_i32 = arith.constant 0 : i32
    %c0_i32_0 = arith.constant 0 : i32
    %c0_i32_1 = arith.constant 0 : i32
    return %c0_i32, %c0_i32_0 : i32, i32
  }
  func.func @transform_1(%arg0: i32, %arg1: i32) -> (i32, i32) {
    %c0_i32 = arith.constant 0 : i32
    %c0_i32_0 = arith.constant 0 : i32
    %c0_i32_1 = arith.constant 0 : i32
    return %c0_i32, %c0_i32_0 : i32, i32
  }
  func.func @transform_2(%arg0: i32, %arg1: i32) -> (i32, i32) {
    %c0_i32 = arith.constant 0 : i32
    %c0_i32_0 = arith.constant 0 : i32
    return %c0_i32, %arg1 : i32, i32
  }
  func.func @transform_3(%arg0: i32, %arg1: i32) -> (i32, i32) {
    %c0_i32 = arith.constant 0 : i32
    %c0_i32_0 = arith.constant 0 : i32
    return %c0_i32, %arg1 : i32, i32
  }
  func.func @transform_4(%arg0: i32, %arg1: i32) -> (i32, i32) {
    %c0_i32 = arith.constant 0 : i32
    %c0_i32_0 = arith.constant 0 : i32
    return %c0_i32, %arg1 : i32, i32
  }
}

</mosaic_0001>

<bundles_post_ra>
// kernel: node_attention_forward.1
= control target key start
LH: loop header
LB: loop body
LE: loop exit
PB: predicated region body
PF: predicated region fallthrough
CT: control target
= control target key end

     0   :  { %s2097_s15 = smov 0   ;;  %s2099_s16 = smov 0   ;;  %s3043_s0 = inlined_call_operand.vmem [shape: f32[24,128], index: 0, kind: input, shape index: {}]   ;;  %s3044_s1 = inlined_call_operand.vmem [shape: f32[64,24], index: 1, kind: input, shape index: {}]   ;;  %s3045_s2 = inlined_call_operand.vmem [shape: s32[1,128], index: 2, kind: input, shape index: {}]   ;;  %s3046_s3 = inlined_call_operand.vmem [shape: s32[1,128], index: 3, kind: input, shape index: {}]   ;;  %s3047_s4 = inlined_call_operand.vmem [shape: f32[1,128], index: 4, kind: output, shape index: {}]  }
   0x1   :  { %s2101_s17 = smov 0  }
   0x2 LB: > { %s26_s18 = sadd.s32 1, %s2055_s16  ;;  %p1473_p0 = scmp.ge.s32.totalorder %s2059_s17, 1  ;;  %s2059_s17 = sphi %s2101_s17, %s14_s17   ;;  %s2055_s16 = sphi %s2099_s16, %s3177_s16   ;;  %s2051_s15 = sphi %s2097_s15, %s3176_s15  }
   0x3   : > { %p28_p1 = scmp.ge.s32.totalorder %s26_s18, 2  ;;  %p180_p2 = scmp.lt.s32.totalorder %s2059_s17, 3 }
   0x5   : > { %s3179_s18 = smov (%p28_p1, %s26_s18), 0  ;;  %p181_p3 = pnand %p1473_p0, %p180_p2 }
   0x7   : > { %184 = sbr.rel (%p181_p3) target bundleno = 1703 (0x6a7), region = 36 }
   0xc   : > { %p214_p4 = scmp.eq.s32.totalorder %s2051_s15, 0 }
   0xd   : > { %v230_v0 = vld [vmem:[%s3043_s0 + $0x10] sm:$0xff] (%p214_p4)  ;;  %v229_v1 = vld [vmem:[%s3043_s0 + $0x8] sm:$0xff] (%p214_p4)  ;;  %v228_v2 = vld [vmem:[%s3043_s0] sm:$0xff] (%p214_p4)  ;;  %vm231_vm0 = vcmask (%p214_p4), 195584   ;;  %vm369_vm1 = vcmask (%p214_p4), 7168   ;;  %v2062_v12 = vmov (%p214_p4), 0.0  }
   0xe   : > { %219 = sbr.rel (!%p214_p4) target bundleno = 221 (0xdd), region = 40  ;;  %1711 = vmatprep.subr.mxu0 (%p214_p4), %v230_v0  ;;  %1921 = vmatprep.subr.mxu1 (%p214_p4), %v230_v0  ;;  %v220_v3 = vld [vmem:[%s3044_s1] sm:$0xff] (%p214_p4)  ;;  %v221_v5 = vld [vmem:[%s3044_s1 + $0x8] sm:$0xff] (%p214_p4)  ;;  %v222_v7 = vld [vmem:[%s3044_s1 + $0x10] sm:$0xff] (%p214_p4)  ;;  %v2061_v11 = vmov (%p214_p4), -1e+30  }
   0xf   : > { %1712 = vmatpush3.msra.mxu0 (%p214_p4), %v230_v0  ;;  %1924 = vmatpush3.msra.mxu1 (%p214_p4), %v230_v0  ;;  %v224_v4 = vld [vmem:[%s3044_s1 + $0x20] sm:$0xff] (%p214_p4)  ;;  %v225_v6 = vld [vmem:[%s3044_s1 + $0x28] sm:$0xff] (%p214_p4)  ;;  %v226_v8 = vld [vmem:[%s3044_s1 + $0x30] sm:$0xff] (%p214_p4)  ;;  %370 = vst.msk [vmem:[#allocation3] sm:$0xff] (%p214_p4), %vm369_vm1, %v2061_v11 }
  0x10   : > { %1713 = vmatprep.subr.mxu0 (%p214_p4), %v229_v1  ;;  %1922 = vmatprep.subr.mxu1 (%p214_p4), %v229_v1  ;;  %v223_v9 = vld [vmem:[%s3044_s1 + $0x18] sm:$0xff] (%p214_p4)  ;;  %371 = vst.msk [vmem:[#allocation3 + $0x8] sm:$0xff] (%p214_p4), %vm369_vm1, %v2061_v11  ;;  %372 = vst.msk [vmem:[#allocation3 + $0x10] sm:$0xff] (%p214_p4), %vm369_vm1, %v2061_v11 }
  0x11   : > { %1714 = vmatpush3.msra.mxu0 (%p214_p4), %v229_v1  ;;  %1925 = vmatpush3.msra.mxu1 (%p214_p4), %v229_v1  ;;  %v227_v10 = vld [vmem:[%s3044_s1 + $0x38] sm:$0xff] (%p214_p4)  ;;  %373 = vst.msk [vmem:[#allocation3 + $0x18] sm:$0xff] (%p214_p4), %vm369_vm1, %v2061_v11  ;;  %374 = vst.msk [vmem:[#allocation3 + $0x20] sm:$0xff] (%p214_p4), %vm369_vm1, %v2061_v11 }
  0x12   : > { %1715 = vmatprep.subr.mxu0 (%p214_p4), %v228_v2  ;;  %1923 = vmatprep.subr.mxu1 (%p214_p4), %v228_v2  ;;  %375 = vst.msk [vmem:[#allocation3 + $0x28] sm:$0xff] (%p214_p4), %vm369_vm1, %v2061_v11  ;;  %376 = vst.msk [vmem:[#allocation3 + $0x30] sm:$0xff] (%p214_p4), %vm369_vm1, %v2061_v11 }
  0x13   : > { %1716 = vmatpush3.msra.mxu0 %v228_v2  ;;  %1926 = vmatpush3.msra.mxu1 %v228_v2  ;;  %377 = vst.msk [vmem:[#allocation3 + $0x38] sm:$0xff] %vm369_vm1, %v2061_v11  ;;  %378 = vst.msk [vmem:[#allocation3 + $0x40] sm:$0xff] %vm369_vm1, %v2061_v11 }
  0x14   : > { %1717 = vmatprep.mubr.msk.f32.mxu0 %vm231_vm0, %v220_v3  ;;  %1723 = vmatprep.mubr.msk.f32.mxu1 %vm231_vm0, %v224_v4  ;;  %379 = vst.msk [vmem:[#allocation3 + $0x48] sm:$0xff] %vm369_vm1, %v2061_v11  ;;  %380 = vst.msk [vmem:[#allocation3 + $0x50] sm:$0xff] %vm369_vm1, %v2061_v11 }
  0x15   : > { %1718 = vmatmul.mubr.msk.f32.vlgmr.msra.gmra.mxu0 %vm231_vm0, %v221_v5  ;;  %1724 = vmatmul.mubr.msk.f32.vlgmr.msra.gmra.mxu1 %vm231_vm0, %v225_v6  ;;  %381 = vst.msk [vmem:[#allocation3 + $0x58] sm:$0xff] %vm369_vm1, %v2061_v11  ;;  %382 = vst.msk [vmem:[#allocation3 + $0x60] sm:$0xff] %vm369_vm1, %v2061_v11 }
  0x16   : > { %1720 = vmatprep.mubr.msk.f32.mxu0 %vm231_vm0, %v222_v7  ;;  %1726 = vmatprep.mubr.msk.f32.mxu1 %vm231_vm0, %v226_v8  ;;  %383 = vst.msk [vmem:[#allocation3 + $0x68] sm:$0xff] %vm369_vm1, %v2061_v11  ;;  %384 = vst.msk [vmem:[#allocation3 + $0x70] sm:$0xff] %vm369_vm1, %v2061_v11 }
  0x17   : > { %385 = vst.msk [vmem:[#allocation3 + $0x78] sm:$0xff] %vm369_vm1, %v2061_v11  ;;  %386 = vst.msk [vmem:[#allocation4] sm:$0xff] %vm369_vm1, %v2062_v12 }
  0x18   : > { %387 = vst.msk [vmem:[#allocation4 + $0x8] sm:$0xff] %vm369_vm1, %v2062_v12  ;;  %388 = vst.msk [vmem:[#allocation4 + $0x10] sm:$0xff] %vm369_vm1, %v2062_v12 }
  0x19   : > { %1721 = vmatmul.mubr.msk.f32.gmra.mxu0 %vm231_vm0, %v223_v9  ;;  %1727 = vmatmul.mubr.msk.f32.gmra.mxu1 %vm231_vm0, %v227_v10  ;;  %389 = vst.msk [vmem:[#allocation4 + $0x18] sm:$0xff] %vm369_vm1, %v2062_v12  ;;  %390 = vst.msk [vmem:[#allocation4 + $0x20] sm:$0xff] %vm369_vm1, %v2062_v12 }
  0x1a   : > { %391 = vst.msk [vmem:[#allocation4 + $0x28] sm:$0xff] %vm369_vm1, %v2062_v12  ;;  %392 = vst.msk [vmem:[#allocation4 + $0x30] sm:$0xff] %vm369_vm1, %v2062_v12 }
  0x1b   : > { %393 = vst.msk [vmem:[#allocation4 + $0x38] sm:$0xff] %vm369_vm1, %v2062_v12  ;;  %394 = vst.msk [vmem:[#allocation4 + $0x40] sm:$0xff] %vm369_vm1, %v2062_v12 }
  0x1c   : > { %395 = vst.msk [vmem:[#allocation4 + $0x48] sm:$0xff] %vm369_vm1, %v2062_v12  ;;  %396 = vst.msk [vmem:[#allocation4 + $0x50] sm:$0xff] %vm369_vm1, %v2062_v12 }
  0x1d   : > { %397 = vst.msk [vmem:[#allocation4 + $0x58] sm:$0xff] %vm369_vm1, %v2062_v12  ;;  %398 = vst.msk [vmem:[#allocation4 + $0x60] sm:$0xff] %vm369_vm1, %v2062_v12 }
  0x1e   : > { %399 = vst.msk [vmem:[#allocation4 + $0x68] sm:$0xff] %vm369_vm1, %v2062_v12  ;;  %400 = vst.msk [vmem:[#allocation4 + $0x70] sm:$0xff] %vm369_vm1, %v2062_v12 }
  0x1f   : > { %401 = vst.msk [vmem:[#allocation4 + $0x78] sm:$0xff] %vm369_vm1, %v2062_v12 }
  0xd5   : > { %v1719_v13 = vpop.f32.mrf.mxu0  ;;  %v1725_v14 = vpop.f32.mrf.mxu1 }
  0xd6   : > { %362 = vst [vmem:[#allocation2] sm:$0xff] %v1719_v13  ;;  %366 = vst [vmem:[#allocation2 + $0x20] sm:$0xff] %v1725_v14 }
  0xd7   : > { %v322_v15 = vpop.f32.mrf.mxu0  ;;  %v342_v16 = vpop.f32.mrf.mxu1 }
  0xd8   : > { %361 = vst [vmem:[#allocation2 + $0x30] sm:$0xff] %v322_v15  ;;  %365 = vst [vmem:[#allocation2 + $0x8] sm:$0xff] %v342_v16 }
  0xd9   : > { %v1722_v17 = vpop.f32.mrf.mxu0  ;;  %v1728_v18 = vpop.f32.mrf.mxu1 }
  0xda   : > { %364 = vst [vmem:[#allocation2 + $0x10] sm:$0xff] %v1722_v17  ;;  %368 = vst [vmem:[#allocation2 + $0x38] sm:$0xff] %v1728_v18 }
  0xdb   : > { %v332_v19 = vpop.f32.mrf.mxu0  ;;  %v352_v20 = vpop.f32.mrf.mxu1 }
  0xdc   : > { %363 = vst [vmem:[#allocation2 + $0x18] sm:$0xff] %v332_v19  ;;  %367 = vst [vmem:[#allocation2 + $0x28] sm:$0xff] %v352_v20 }
  0xdd PF: > { %v410_v21 = vlaneseq  ;;  %v2196_v25 = vld [vmem:[%s3045_s2] ss:$0 sm:$0xff]  ;;  %v3089_v34 = vmov 0  ;;  %v3091_v35 = vmov 0  ;;  %v2063_v36 = vmov 0.0   ;;  %p1550_p5 = scmp.ne.s32.totalorder %s2051_s15, 0 }
  0xde   : > { %v2201_v26 = vld [vmem:[%s3046_s3] ss:$0 sm:$0xff]  ;;  %v2064_v38 = vmov 1.0   ;;  %v3093_v40 = vmov 0  ;;  %v3095_v43 = vmov 0  ;;  %v3098_v44 = vmov 0 }
  0xdf   : > { %v402_v22 = vld [vmem:[#allocation2 + $0x30] sm:$0xff]  ;;  %v406_v23 = vld [vmem:[#allocation2 + $0x8] sm:$0xff]  ;;  %v2191_v24 = vshrl.u32 %v410_v21, 7  ;;  %v3101_v47 = vmov 0  ;;  %v3104_v49 = vmov 0  ;;  %v3107_v51 = vmov 0 }
  0xe0   : > { %1761 = vmatprep.mubr.f32.mxu0 %v402_v22  ;;  %1799 = vmatprep.mubr.f32.mxu1 %v406_v23  ;;  %v3110_v57 = vmov 0  ;;  %v3113_v61 = vmov 0  ;;  %v3116_v62 = vmov 0  ;;  %v3119_v1 = vmov 0  ;;  %v403_v12 = vld [vmem:[#allocation2] sm:$0xff] }
  0xe1   : > { %v426_v27 = vadd.s32 120, %v2191_v24  ;;  %v425_v28 = vadd.s32 112, %v2191_v24  ;;  %v424_v29 = vadd.s32 104, %v2191_v24  ;;  %v423_v30 = vadd.s32 96, %v2191_v24  ;;  %v407_v13 = vld [vmem:[#allocation2 + $0x20] sm:$0xff]  ;;  %v405_v16 = vld [vmem:[#allocation2 + $0x10] sm:$0xff] }
  0xe2   : > { %v422_v31 = vadd.s32 88, %v2191_v24  ;;  %v2209_v32 = vadd.s32 80, %v2191_v24  ;;  %v2212_v33 = vadd.s32 72, %v2191_v24  ;;  %v2246_v41 = vadd.s32 64, %v2191_v24  ;;  %v409_v17 = vld [vmem:[#allocation2 + $0x38] sm:$0xff] }
  0xe3   : > { %vm2215_vm2 = vcmp.eq.s32.totalorder %v426_v27, %v2196_v25  ;;  %vm500_vm3 = vcmp.eq.s32.totalorder %v426_v27, %v2201_v26  ;;  %vm2221_vm4 = vcmp.eq.s32.totalorder %v425_v28, %v2196_v25  ;;  %vm499_vm5 = vcmp.eq.s32.totalorder %v425_v28, %v2201_v26  ;;  %v404_v14 = vld [vmem:[#allocation2 + $0x18] sm:$0xff]  ;;  %v408_v15 = vld [vmem:[#allocation2 + $0x28] sm:$0xff] }
  0xe4   : > { %v3090_v34 = vsel %vm2215_vm2, 4294967295, %v3089_v34  ;;  %v3092_v35 = vsel %vm2221_vm4, 4294967295, %v3091_v35  ;;  %v2229_v37 = vsel %vm2215_vm2, 1.0, %v2063_v36  ;;  %1729 = vmatprep.subr.msk.mxu0 %vm2215_vm2, %v2064_v38  ;;  %1767 = vmatprep.subr.msk.mxu1 %vm500_vm3, %v2064_v38  ;;  %v2238_v39 = vsel %vm2221_vm4, 1.0, %v2063_v36 }
  0xe5   : > { %vm2241_vm6 = vcmp.eq.s32.totalorder %v424_v29, %v2196_v25  ;;  %1730 = vmatpush3.msk.msra.mxu0 %vm2215_vm2, %v2064_v38  ;;  %1768 = vmatpush3.msk.msra.mxu1 %vm500_vm3, %v2064_v38  ;;  %vm498_vm7 = vcmp.eq.s32.totalorder %v424_v29, %v2201_v26  ;;  %vm2259_vm8 = vcmp.eq.s32.totalorder %v423_v30, %v2196_v25  ;;  %v418_v52 = vadd.s32 56, %v2191_v24 }
  0xe6   : > { %v3094_v40 = vsel %vm2241_vm6, 4294967295, %v3093_v40  ;;  %v2255_v42 = vsel %vm2241_vm6, 1.0, %v2063_v36  ;;  %v3096_v43 = vsel %vm2259_vm8, 4294967295, %v3095_v43  ;;  %vm2264_vm9 = vcmp.eq.s32.totalorder %v422_v31, %v2196_v25  ;;  %1731 = vmatprep.subr.msk.mxu0 %vm2221_vm4, %v2064_v38  ;;  %1769 = vmatprep.subr.msk.mxu1 %vm499_vm5, %v2064_v38 }
  0xe7   : > { %3097 = vst [vmem:[#allocation5_spill] sm:$0xff] %v3096_v43  ;;  %v3099_v44 = vsel %vm2264_vm9, 4294967295, %v3098_v44  ;;  %v2277_v45 = vsel %vm2259_vm8, 1.0, %v2063_v36  ;;  %v2282_v46 = vsel %vm2264_vm9, 1.0, %v2063_v36  ;;  %vm2286_vm10 = vcmp.eq.s32.totalorder %v2209_v32, %v2196_v25  ;;  %1732 = vmatpush3.msk.msra.mxu0 %vm2221_vm4, %v2064_v38  ;;  %1770 = vmatpush3.msk.msra.mxu1 %vm499_vm5, %v2064_v38 }
  0xe8   : > { %3100 = vst [vmem:[#allocation6_spill] sm:$0xff] %v3099_v44  ;;  %v3102_v47 = vsel %vm2286_vm10, 4294967295, %v3101_v47  ;;  %vm497_vm11 = vcmp.eq.s32.totalorder %v423_v30, %v2201_v26  ;;  %v2300_v48 = vsel %vm2286_vm10, 1.0, %v2063_v36  ;;  %vm2304_vm12 = vcmp.eq.s32.totalorder %v2212_v33, %v2196_v25  ;;  %1733 = vmatprep.subr.msk.mxu0 %vm2241_vm6, %v2064_v38  ;;  %1771 = vmatprep.subr.msk.mxu1 %vm498_vm7, %v2064_v38 }
  0xe9   : > { %3103 = vst [vmem:[#allocation7_spill] sm:$0xff] %v3102_v47  ;;  %v3105_v49 = vsel %vm2304_vm12, 4294967295, %v3104_v49  ;;  %vm496_vm13 = vcmp.eq.s32.totalorder %v422_v31, %v2201_v26  ;;  %v2318_v50 = vsel %vm2304_vm12, 1.0, %v2063_v36  ;;  %vm2322_vm14 = vcmp.eq.s32.totalorder %v2246_v41, %v2196_v25  ;;  %1734 = vmatpush3.msk.msra.mxu0 %vm2241_vm6, %v2064_v38  ;;  %1772 = vmatpush3.msk.msra.mxu1 %vm498_vm7, %v2064_v38 }
  0xea   : > { %3106 = vst [vmem:[#allocation8_spill] sm:$0xff] %v3105_v49  ;;  %v3108_v51 = vsel %vm2322_vm14, 4294967295, %v3107_v51  ;;  %v2336_v53 = vsel %vm2322_vm14, 1.0, %v2063_v36  ;;  %v417_v54 = vadd.s32 48, %v2191_v24  ;;  %v416_v55 = vadd.s32 40, %v2191_v24  ;;  %1735 = vmatprep.subr.msk.mxu0 %vm2259_vm8, %v2064_v38  ;;  %1773 = vmatprep.subr.msk.mxu1 %vm497_vm11, %v2064_v38 }
  0xeb   : > { %3109 = vst [vmem:[#allocation9_spill] sm:$0xff] %v3108_v51  ;;  %v2341_v56 = vadd.s32 32, %v2191_v24  ;;  %vm2350_vm15 = vcmp.eq.s32.totalorder %v418_v52, %v2196_v25  ;;  %v2355_v58 = vadd.s32 24, %v2191_v24  ;;  %v2358_v59 = vadd.s32 16, %v2191_v24  ;;  %1736 = vmatpush3.msk.msra.mxu0 %vm2259_vm8, %v2064_v38  ;;  %1774 = vmatpush3.msk.msra.mxu1 %vm497_vm11, %v2064_v38 }
  0xec   : > { %v3111_v57 = vsel %vm2350_vm15, 4294967295, %v3110_v57  ;;  %vm495_vm0 = vcmp.eq.s32.totalorder %v2209_v32, %v2201_v26  ;;  %v2371_v60 = vsel %vm2350_vm15, 1.0, %v2063_v36  ;;  %vm2374_vm1 = vcmp.eq.s32.totalorder %v417_v54, %v2196_v25  ;;  %1737 = vmatprep.subr.msk.mxu0 %vm2264_vm9, %v2064_v38  ;;  %1775 = vmatprep.subr.msk.mxu1 %vm496_vm13, %v2064_v38 }
  0xed   : > { %3112 = vst [vmem:[#allocation10_spill] sm:$0xff] %v3111_v57  ;;  %v3114_v61 = vsel %vm2374_vm1, 4294967295, %v3113_v61  ;;  %vm2379_vm3 = vcmp.eq.s32.totalorder %v416_v55, %v2196_v25  ;;  %v2392_v63 = vsel %vm2374_vm1, 1.0, %v2063_v36  ;;  %vm2401_vm5 = vcmp.eq.s32.totalorder %v2341_v56, %v2196_v25  ;;  %1738 = vmatpush3.msk.msra.mxu0 %vm2264_vm9, %v2064_v38  ;;  %1776 = vmatpush3.msk.msra.mxu1 %vm496_vm13, %v2064_v38 }
  0xee   : > { %3115 = vst [vmem:[#allocation11_spill] sm:$0xff] %v3114_v61  ;;  %v3117_v62 = vsel %vm2379_vm3, 4294967295, %v3116_v62  ;;  %v2397_v0 = vsel %vm2379_vm3, 1.0, %v2063_v36  ;;  %v3120_v1 = vsel %vm2401_vm5, 4294967295, %v3119_v1  ;;  %v2416_v2 = vsel %vm2401_vm5, 1.0, %v2063_v36  ;;  %1739 = vmatprep.subr.msk.mxu0 %vm2286_vm10, %v2064_v38  ;;  %1777 = vmatprep.subr.msk.mxu1 %vm495_vm0, %v2064_v38 }
  0xef   : > { %3118 = vst [vmem:[#allocation12_spill] sm:$0xff] %v3117_v62  ;;  %3121 = vst [vmem:[#allocation13_spill] sm:$0xff] %v3120_v1  ;;  %vm2420_vm11 = vcmp.eq.s32.totalorder %v2355_v58, %v2196_v25  ;;  %v3122_v3 = vmov 0  ;;  %vm2438_vm13 = vcmp.eq.s32.totalorder %v2358_v59, %v2196_v25  ;;  %v3125_v5 = vmov 0  ;;  %1740 = vmatpush3.msk.msra.mxu0 %vm2286_vm10, %v2064_v38  ;;  %1778 = vmatpush3.msk.msra.mxu1 %vm495_vm0, %v2064_v38 }
  0xf0   : > { %v3123_v3 = vsel %vm2420_vm11, 4294967295, %v3122_v3  ;;  %v2434_v4 = vsel %vm2420_vm11, 1.0, %v2063_v36  ;;  %v3126_v5 = vsel %vm2438_vm13, 4294967295, %v3125_v5  ;;  %v412_v6 = vadd.s32 8, %v2191_v24  ;;  %1741 = vmatprep.subr.msk.mxu0 %vm2304_vm12, %v2064_v38 }
  0xf1   : > { %3124 = vst [vmem:[#allocation14_spill] sm:$0xff] %v3123_v3  ;;  %3127 = vst [vmem:[#allocation15_spill] sm:$0xff] %v3126_v5  ;;  %vm493_vm7 = vcmp.eq.s32.totalorder %v2246_v41, %v2201_v26  ;;  %v2455_v7 = vsel %vm2438_vm13, 1.0, %v2063_v36  ;;  %vm2459_vm2 = vcmp.eq.s32.totalorder %v2191_v24, %v2196_v25  ;;  %v3128_v8 = vmov 0  ;;  %1742 = vmatpush3.msk.msra.mxu0 %vm2304_vm12, %v2064_v38 }
  0xf2   : > { %v3129_v8 = vsel %vm2459_vm2, 4294967295, %v3128_v8  ;;  %vm3131_vm0 = vcmp.eq.s32.totalorder %v2212_v33, %v2201_v26  ;;  %vm2471_vm4 = vcmp.eq.s32.totalorder %v412_v6, %v2196_v25  ;;  %v3132_v9 = vmov 0  ;;  %1743 = vmatprep.subr.msk.mxu0 %vm2322_vm14, %v2064_v38 }
  0xf3   : > { %3130 = vst [vmem:[#allocation16_spill] sm:$0xff] %v3129_v8  ;;  %1779 = vmatprep.subr.msk.mxu1 %vm3131_vm0, %v2064_v38  ;;  %v3133_v9 = vsel %vm2471_vm4, 4294967295, %v3132_v9  ;;  %v2478_v10 = vsel %vm2459_vm2, 1.0, %v2063_v36  ;;  %vm3135_vm6 = vmmov %vm3131_vm0  ;;  %vm492_vm0 = vcmp.eq.s32.totalorder %v418_v52, %v2201_v26  ;;  %v2491_v11 = vsel %vm2471_vm4, 1.0, %v2063_v36  ;;  %1744 = vmatpush3.msk.msra.mxu0 %vm2322_vm14, %v2064_v38 }
  0xf4   : > { %3134 = vst [vmem:[#allocation17_spill] sm:$0xff] %v3133_v9  ;;  %1780 = vmatpush3.msk.msra.mxu1 %vm3135_vm6, %v2064_v38  ;;  %vm491_vm6 = vcmp.eq.s32.totalorder %v417_v54, %v2201_v26  ;;  %1745 = vmatprep.subr.msk.mxu0 %vm2350_vm15, %v2064_v38  ;;  %vm490_vm8 = vcmp.eq.s32.totalorder %v416_v55, %v2201_v26 }
  0xf5   : > { %1781 = vmatprep.subr.msk.mxu1 %vm493_vm7, %v2064_v38  ;;  %1746 = vmatpush3.msk.msra.mxu0 %vm2350_vm15, %v2064_v38 }
  0xf6   : > { %1782 = vmatpush3.msk.msra.mxu1 %vm493_vm7, %v2064_v38  ;;  %1747 = vmatprep.subr.msk.mxu0 %vm2374_vm1, %v2064_v38  ;;  %vm489_vm7 = vcmp.eq.s32.totalorder %v2341_v56, %v2201_v26 }
  0xf7   : > { %1783 = vmatprep.subr.msk.mxu1 %vm492_vm0, %v2064_v38  ;;  %1748 = vmatpush3.msk.msra.mxu0 %vm2374_vm1, %v2064_v38 }
  0xf8   : > { %1784 = vmatpush3.msk.msra.mxu1 %vm492_vm0, %v2064_v38  ;;  %1749 = vmatprep.subr.msk.mxu0 %vm2379_vm3, %v2064_v38  ;;  %vm488_vm0 = vcmp.eq.s32.totalorder %v2355_v58, %v2201_v26 }
  0xf9   : > { %1785 = vmatprep.subr.msk.mxu1 %vm491_vm6, %v2064_v38  ;;  %1750 = vmatpush3.msk.msra.mxu0 %vm2379_vm3, %v2064_v38 }
  0xfa   : > { %1786 = vmatpush3.msk.msra.mxu1 %vm491_vm6, %v2064_v38  ;;  %1751 = vmatprep.subr.msk.mxu0 %vm2401_vm5, %v2064_v38  ;;  %vm487_vm6 = vcmp.eq.s32.totalorder %v2358_v59, %v2201_v26 }
  0xfb   : > { %1787 = vmatprep.subr.msk.mxu1 %vm490_vm8, %v2064_v38  ;;  %1752 = vmatpush3.msk.msra.mxu0 %vm2401_vm5, %v2064_v38 }
  0xfc   : > { %1788 = vmatpush3.msk.msra.mxu1 %vm490_vm8, %v2064_v38  ;;  %1753 = vmatprep.subr.msk.mxu0 %vm2420_vm11, %v2064_v38  ;;  %vm486_vm8 = vcmp.eq.s32.totalorder %v412_v6, %v2201_v26 }
  0xfd   : > { %1789 = vmatprep.subr.msk.mxu1 %vm489_vm7, %v2064_v38  ;;  %1754 = vmatpush3.msk.msra.mxu0 %vm2420_vm11, %v2064_v38 }
  0xfe   : > { %1790 = vmatpush3.msk.msra.mxu1 %vm489_vm7, %v2064_v38  ;;  %1755 = vmatprep.subr.msk.mxu0 %vm2438_vm13, %v2064_v38  ;;  %vm485_vm7 = vcmp.eq.s32.totalorder %v2191_v24, %v2201_v26 }
  0xff   : > { %1791 = vmatprep.subr.msk.mxu1 %vm488_vm0, %v2064_v38  ;;  %1756 = vmatpush3.msk.msra.mxu0 %vm2438_vm13, %v2064_v38 }
 0x100   : > { %1792 = vmatpush3.msk.msra.mxu1 %vm488_vm0, %v2064_v38  ;;  %1757 = vmatprep.subr.msk.mxu0 %vm2471_vm4, %v2064_v38  ;;  %vm2065_vm0 = vmmov 0  }
 0x101   : > { %1793 = vmatprep.subr.msk.mxu1 %vm487_vm6, %v2064_v38  ;;  %1758 = vmatpush3.msk.msra.mxu0 %vm2471_vm4, %v2064_v38 }
 0x102   : > { %1794 = vmatpush3.msk.msra.mxu1 %vm487_vm6, %v2064_v38  ;;  %1759 = vmatprep.subr.msk.mxu0 %vm2459_vm2, %v2064_v38  ;;  %vm707_vm6 = vcmask 261120  }
 0x103   : > { %1795 = vmatprep.subr.msk.mxu1 %vm486_vm8, %v2064_v38  ;;  %1760 = vmatpush3.msk.msra.mxu0 %vm2459_vm2, %v2064_v38 }
 0x104   : > { %1796 = vmatpush3.msk.msra.mxu1 %vm486_vm8, %v2064_v38  ;;  %1762 = vmatmul.mubr.f32.vlgmr.msra.gmra.mxu0 %v403_v12 }
 0x105   : > { %1797 = vmatprep.subr.msk.mxu1 %vm485_vm7, %v2064_v38  ;;  %1764 = vmatprep.mubr.f32.mxu0 %v404_v14 }
 0x106   : > { %1798 = vmatpush3.msk.msra.mxu1 %vm485_vm7, %v2064_v38  ;;  %1805 = vmatprep.subr.mxu0 %v2063_v36 }
 0x107   : > { %1800 = vmatmul.mubr.f32.vlgmr.msra.gmra.mxu1 %v407_v13 }
 0x108   : > { %1802 = vmatprep.mubr.f32.mxu1 %v408_v15  ;;  %1765 = vmatmul.mubr.f32.gmra.mxu0 %v405_v16 }
 0x109   : > { %1813 = vmatprep.mubr.msk.f32.mxu0 %vm2065_vm0, %v2063_v36 }
 0x10b   : > { %1803 = vmatmul.mubr.f32.gmra.mxu1 %v409_v17 }
 0x1c4   : > { %v1763_v18 = vpop.f32.mrf.mxu0 }
 0x1c6   : > { %v599_v20 = vpop.f32.mrf.mxu0 }
 0x1c7   : > { %v1801_v19 = vpop.f32.mrf.mxu1 }
 0x1c8   : > { %v1766_v22 = vpop.f32.mrf.mxu0  ;;  %v704_v29 = vmul.f32 %v1801_v19, %v1763_v18 }
 0x1c9   : > { %v684_v21 = vpop.f32.mrf.mxu1 }
 0x1ca   : > { %v609_v26 = vpop.f32.mrf.mxu0  ;;  %v703_v30 = vmul.f32 %v684_v21, %v599_v20 }
 0x1cb   : > { %v1804_v23 = vpop.f32.mrf.mxu1 }
 0x1cc   : > { %v706_v25 = vmul.f32 %v1804_v23, %v1766_v22 }
 0x1cd   : > { %v694_v27 = vpop.f32.mrf.mxu1 }
 0x1ce   : > { %v705_v28 = vmul.f32 %v694_v27, %v609_v26  ;;  %1806 = vmatpush3.msra.mxu0 %v706_v25 }
 0x1cf   : > { %1807 = vmatprep.subr.mxu0 %v2063_v36 }
 0x1d0   : > { %1808 = vmatpush3.msra.mxu0 %v705_v28 }
 0x1d1   : > { %1809 = vmatprep.subr.mxu0 %v2063_v36 }
 0x1d2   : > { %1810 = vmatpush3.msra.mxu0 %v704_v29 }
 0x1d3   : > { %1811 = vmatprep.subr.mxu0 %v2063_v36 }
 0x1d4   : > { %1812 = vmatpush3.msra.mxu0 %v703_v30 }
 0x1d5   : > { %1814 = vmatmul.mubr.msk.f32.vlgmr.msra.gmra.mxu0 %vm707_vm6, %v2064_v38 }
 0x293   : > { %783 = sbr.rel (%p1550_p5) target bundleno = 1350 (0x546), region = 44 }
 0x295   : > { %v2582_v31 = vpop.f32.mrf.mxu0 }
 0x297   : > { %v1815_v32 = vpop.f32.mrf.mxu0 }
 0x298   : > { %v3062_v33 = vsub.s32 0, %v2191_v24  ;;  %vm3136_vm8 = vnez %v3096_v43  ;;  %vm3137_vm7 = vnez %v3094_v40  ;;  %vm3138_vm0 = vnez %v3092_v35  ;;  %v2656_v21 = vld [vmem:[#allocation3] sm:$0xff]  ;;  %v2658_v22 = vld [vmem:[#allocation3 + $0x10] sm:$0xff]  ;;  %v2666_v28 = vld [vmem:[#allocation3 + $0x8] sm:$0xff] }
 0x299   : > { %vm3139_vm6 = vnez %v3090_v34  ;;  %v2066_v19 = vmov 0.0   ;;  %v2068_v20 = vmov 1.0   ;;  %v2668_v29 = vld [vmem:[#allocation3 + $0x18] sm:$0xff]  ;;  %v2761_v30 = vld [vmem:[#allocation3 + $0x60] sm:$0xff]  ;;  %v2780_v5 = vld [vmem:[#allocation3 + $0x70] sm:$0xff]  ;;  %v3141_v51 = vsub.s32 0, %v2191_v24 }
 0x29a   : > { %v787_v41 = vrot.slane %v2582_v31, %v3062_v33  ;;  %1816 = vmatprep.subr.mxu0 %v2066_v19  ;;  %1154 = vst [vmem:[%s3047_s4] sm:$0x1] %v2066_v19 }
 0x29b   : > { %1817 = vmatpush3.msk.msra.mxu0 %vm3139_vm6, %v2068_v20 }
 0x29c   : > { %v788_v52 = vsel %vm2459_vm2, %v787_v41, -1e+30  ;;  %v790_v36 = vsel %vm2438_vm13, %v787_v41, -1e+30  ;;  %v789_v38 = vsel %vm2471_vm4, %v787_v41, -1e+30  ;;  %1818 = vmatprep.subr.mxu0 %v2066_v19 }
 0x29d   : > { %820 = vmax.xlane.f32.xlu0 %v788_v52  ;;  %824 = vmax.xlane.f32.xlu1 %v790_v36  ;;  %v791_v54 = vsel %vm2420_vm11, %v787_v41, -1e+30  ;;  %v792_v55 = vsel %vm2401_vm5, %v787_v41, -1e+30  ;;  %v793_v56 = vsel %vm2379_vm3, %v787_v41, -1e+30 }
 0x29e   : > { %v794_v58 = vsel %vm2374_vm1, %v787_v41, -1e+30  ;;  %v795_v59 = vsel %vm2350_vm15, %v787_v41, -1e+30  ;;  %v796_v6 = vsel %vm2322_vm14, %v787_v41, -1e+30  ;;  %1819 = vmatpush3.msk.msra.mxu0 %vm3138_vm0, %v2068_v20 }
 0x29f   : > { %v797_v12 = vsel %vm2304_vm12, %v787_v41, -1e+30  ;;  %v798_v13 = vsel %vm2286_vm10, %v787_v41, -1e+30  ;;  %v799_v14 = vsel %vm2264_vm9, %v787_v41, -1e+30  ;;  %1820 = vmatprep.subr.mxu0 %v2066_v19 }
 0x2a0   : > { %v800_v15 = vsel %vm3136_vm8, %v787_v41, -1e+30  ;;  %v801_v16 = vsel %vm3137_vm7, %v787_v41, -1e+30  ;;  %v802_v17 = vsel %vm3138_vm0, %v787_v41, -1e+30  ;;  %1821 = vmatpush3.msk.msra.mxu0 %vm3137_vm7, %v2068_v20 }
 0x2a1   : > { %822 = vmax.xlane.f32.xlu0 %v789_v38  ;;  %826 = vmax.xlane.f32.xlu1 %v791_v54  ;;  %v803_v18 = vsel %vm3139_vm6, %v787_v41, -1e+30  ;;  %vm2067_vm2 = vmmov 0   ;;  %v2685_v54 = vld [vmem:[#allocation3 + $0x20] sm:$0xff] }
 0x2a2   : > { %1848 = vmatprep.mubr.msk.f32.mxu0 %vm2067_vm2, %v2066_v19  ;;  %1822 = vmatprep.subr.mxu0 %v2066_v19  ;;  %vm3140_vm2 = vnez %v3129_v8 }
 0x2a3   : > { %1823 = vmatpush3.msk.msra.mxu0 %vm3136_vm8, %v2068_v20  ;;  %vm1121_vm8 = vcmask 7168  }
 0x2a4   : > { %1824 = vmatprep.subr.mxu0 %v2066_v19 }
 0x2a5   : > { %828 = vmax.xlane.f32.xlu0 %v792_v55  ;;  %830 = vmax.xlane.f32.xlu1 %v793_v56  ;;  %v2687_v55 = vld [vmem:[#allocation3 + $0x28] sm:$0xff] }
 0x2a6   : > { %1825 = vmatpush3.msk.msra.mxu0 %vm2264_vm9, %v2068_v20 }
 0x2a7   : > { %1826 = vmatprep.subr.mxu0 %v2066_v19 }
 0x2a8   : > { %1827 = vmatpush3.msk.msra.mxu0 %vm2286_vm10, %v2068_v20 }
 0x2a9   : > { %832 = vmax.xlane.f32.xlu0 %v794_v58  ;;  %834 = vmax.xlane.f32.xlu1 %v795_v59  ;;  %v2782_v58 = vld [vmem:[#allocation3 + $0x78] sm:$0xff] }
 0x2aa   : > { %1828 = vmatprep.subr.mxu0 %v2066_v19 }
 0x2ab   : > { %1829 = vmatpush3.msk.msra.mxu0 %vm2304_vm12, %v2068_v20 }
 0x2ac   : > { %1830 = vmatprep.subr.mxu0 %v2066_v19 }
 0x2ad   : > { %836 = vmax.xlane.f32.xlu0 %v796_v6  ;;  %838 = vmax.xlane.f32.xlu1 %v797_v12 }
 0x2ae   : > { %1831 = vmatpush3.msk.msra.mxu0 %vm2322_vm14, %v2068_v20 }
 0x2af   : > { %1832 = vmatprep.subr.mxu0 %v2066_v19 }
 0x2b0   : > { %1833 = vmatpush3.msk.msra.mxu0 %vm2350_vm15, %v2068_v20 }
 0x2b1   : > { %840 = vmax.xlane.f32.xlu0 %v798_v13  ;;  %842 = vmax.xlane.f32.xlu1 %v799_v14  ;;  %v2704_v14 = vld [vmem:[#allocation3 + $0x30] sm:$0xff] }
 0x2b2   : > { %1834 = vmatprep.subr.mxu0 %v2066_v19 }
 0x2b3   : > { %1835 = vmatpush3.msk.msra.mxu0 %vm2374_vm1, %v2068_v20 }
 0x2b4   : > { %1836 = vmatprep.subr.mxu0 %v2066_v19 }
 0x2b5   : > { %844 = vmax.xlane.f32.xlu0 %v800_v15  ;;  %846 = vmax.xlane.f32.xlu1 %v801_v16  ;;  %v2706_v15 = vld [vmem:[#allocation3 + $0x38] sm:$0xff]  ;;  %v2742_v16 = vld [vmem:[#allocation3 + $0x50] sm:$0xff] }
 0x2b6   : > { %1837 = vmatpush3.msk.msra.mxu0 %vm2379_vm3, %v2068_v20 }
 0x2b7   : > { %1838 = vmatprep.subr.mxu0 %v2066_v19 }
 0x2b8   : > { %1839 = vmatpush3.msk.msra.mxu0 %vm2401_vm5, %v2068_v20 }
 0x2b9   : > { %848 = vmax.xlane.f32.xlu0 %v802_v17  ;;  %850 = vmax.xlane.f32.xlu1 %v803_v18 }
 0x2ba   : > { %1840 = vmatprep.subr.mxu0 %v2066_v19 }
 0x2bb   : > { %1841 = vmatpush3.msk.msra.mxu0 %vm2420_vm11, %v2068_v20 }
 0x2bc   : > { %1842 = vmatprep.subr.mxu0 %v2066_v19 }
 0x2bd   : > { %1843 = vmatpush3.msk.msra.mxu0 %vm2438_vm13, %v2068_v20 }
 0x2be   : > { %1844 = vmatprep.subr.mxu0 %v2066_v19 }
 0x2bf   : > { %1845 = vmatpush3.msk.msra.mxu0 %vm2471_vm4, %v2068_v20 }
 0x2c0   : > { %1846 = vmatprep.subr.mxu0 %v2066_v19 }
 0x2c1   : > { %1847 = vmatpush3.msk.msra.mxu0 %vm3140_vm2, %v2068_v20 }
 0x326   : > { %v821_v23 = vpop.xlane.xlu0 %820  ;;  %v825_v25 = vpop.xlane.xlu1 %824 }
 0x327   : > { %v2661_v26 = vmax.f32 %v2656_v21, %v821_v23  ;;  %v2664_v27 = vmax.f32 %v2658_v22, %v825_v25  ;;  %v2723_v25 = vld [vmem:[#allocation3 + $0x40] sm:$0xff] }
 0x329   : > { %1138 = vst.msk [vmem:[#allocation3] sm:$0xff] %vm1121_vm8, %v2661_v26  ;;  %868 = vxpose.xlu0.b32.start [1/16] (narrow) %v2661_v26, 8  ;;  %1140 = vst.msk [vmem:[#allocation3 + $0x10] sm:$0xff] %vm1121_vm8, %v2664_v27 }
 0x32a   : > { %v823_v41 = vpop.xlane.xlu0 %822  ;;  %v827_v52 = vpop.xlane.xlu1 %826 }
 0x32b   : > { %v2680_v36 = vmax.f32 %v2666_v28, %v823_v41  ;;  %v2683_v38 = vmax.f32 %v2668_v29, %v827_v52  ;;  %v2725_v41 = vld [vmem:[#allocation3 + $0x48] sm:$0xff]  ;;  %v2744_v52 = vld [vmem:[#allocation3 + $0x58] sm:$0xff] }
 0x32d   : > { %1139 = vst.msk [vmem:[#allocation3 + $0x8] sm:$0xff] %vm1121_vm8, %v2680_v36  ;;  %869 = vxpose.xlu0.b32.cont [2/16] (narrow) %v2680_v36, 8  ;;  %1141 = vst.msk [vmem:[#allocation3 + $0x18] sm:$0xff] %vm1121_vm8, %v2683_v38 }
 0x32e   : > { %v829_v59 = vpop.xlane.xlu0 %828  ;;  %v831_v6 = vpop.xlane.xlu1 %830 }
 0x32f   : > { %v2699_v12 = vmax.f32 %v2685_v54, %v829_v59  ;;  %v2702_v13 = vmax.f32 %v2687_v55, %v831_v6  ;;  %v2763_v59 = vld [vmem:[#allocation3 + $0x68] sm:$0xff] }
 0x331   : > { %870 = vxpose.xlu0.b32.cont [3/16] (narrow) %v2664_v27, 8  ;;  %1142 = vst.msk [vmem:[#allocation3 + $0x20] sm:$0xff] %vm1121_vm8, %v2699_v12  ;;  %1143 = vst.msk [vmem:[#allocation3 + $0x28] sm:$0xff] %vm1121_vm8, %v2702_v13 }
 0x332   : > { %v833_v18 = vpop.xlane.xlu0 %832  ;;  %v835_v19 = vpop.xlane.xlu1 %834 }
 0x333   : > { %v2718_v20 = vmax.f32 %v2704_v14, %v833_v18  ;;  %v2721_v23 = vmax.f32 %v2706_v15, %v835_v19 }
 0x335   : > { %871 = vxpose.xlu0.b32.cont [4/16] (narrow) %v2683_v38, 8  ;;  %1144 = vst.msk [vmem:[#allocation3 + $0x30] sm:$0xff] %vm1121_vm8, %v2718_v20  ;;  %1145 = vst.msk [vmem:[#allocation3 + $0x38] sm:$0xff] %vm1121_vm8, %v2721_v23 }
 0x336   : > { %v837_v6 = vpop.xlane.xlu0 %836  ;;  %v839_v18 = vpop.xlane.xlu1 %838 }
 0x337   : > { %v2737_v19 = vmax.f32 %v2723_v25, %v837_v6  ;;  %v2740_v17 = vmax.f32 %v2725_v41, %v839_v18 }
 0x339   : > { %872 = vxpose.xlu0.b32.cont [5/16] (narrow) %v2699_v12, 8  ;;  %1146 = vst.msk [vmem:[#allocation3 + $0x40] sm:$0xff] %vm1121_vm8, %v2737_v19  ;;  %1147 = vst.msk [vmem:[#allocation3 + $0x48] sm:$0xff] %vm1121_vm8, %v2740_v17 }
 0x33a   : > { %v841_v6 = vpop.xlane.xlu0 %840  ;;  %v843_v18 = vpop.xlane.xlu1 %842 }
 0x33b   : > { %v2756_v32 = vmax.f32 %v2742_v16, %v841_v6  ;;  %v2759_v56 = vmax.f32 %v2744_v52, %v843_v18 }
 0x33d   : > { %873 = vxpose.xlu0.b32.cont [6/16] (narrow) %v2702_v13, 8  ;;  %1148 = vst.msk [vmem:[#allocation3 + $0x50] sm:$0xff] %vm1121_vm8, %v2756_v32  ;;  %1149 = vst.msk [vmem:[#allocation3 + $0x58] sm:$0xff] %vm1121_vm8, %v2759_v56 }
 0x33e   : > { %v845_v6 = vpop.xlane.xlu0 %844  ;;  %v847_v18 = vpop.xlane.xlu1 %846 }
 0x33f   : > { %v2775_v8 = vmax.f32 %v2761_v30, %v845_v6  ;;  %v2778_v9 = vmax.f32 %v2763_v59, %v847_v18 }
 0x341   : > { %874 = vxpose.xlu0.b32.cont [7/16] (narrow) %v2718_v20, 8  ;;  %1150 = vst.msk [vmem:[#allocation3 + $0x60] sm:$0xff] %vm1121_vm8, %v2775_v8  ;;  %1151 = vst.msk [vmem:[#allocation3 + $0x68] sm:$0xff] %vm1121_vm8, %v2778_v9 }
 0x342   : > { %v849_v6 = vpop.xlane.xlu0 %848  ;;  %v851_v18 = vpop.xlane.xlu1 %850 }
 0x343   : > { %v2794_v1 = vmax.f32 %v2780_v5, %v849_v6  ;;  %v2797_v62 = vmax.f32 %v2782_v58, %v851_v18 }
 0x345   : > { %875 = vxpose.xlu0.b32.cont [8/16] (narrow) %v2721_v23, 8  ;;  %1152 = vst.msk [vmem:[#allocation3 + $0x70] sm:$0xff] %vm1121_vm8, %v2794_v1  ;;  %1153 = vst.msk [vmem:[#allocation3 + $0x78] sm:$0xff] %vm1121_vm8, %v2797_v62 }
 0x349   : > { %876 = vxpose.xlu0.b32.cont [9/16] (narrow) %v2737_v19, 8 }
 0x34d   : > { %877 = vxpose.xlu0.b32.cont [10/16] (narrow) %v2740_v17, 8 }
 0x351   : > { %878 = vxpose.xlu0.b32.cont [11/16] (narrow) %v2756_v32, 8 }
 0x355   : > { %879 = vxpose.xlu0.b32.cont [12/16] (narrow) %v2759_v56, 8 }
 0x359   : > { %880 = vxpose.xlu0.b32.cont [13/16] (narrow) %v2775_v8, 8 }
 0x35d   : > { %881 = vxpose.xlu0.b32.cont [14/16] (narrow) %v2778_v9, 8 }
 0x361   : > { %882 = vxpose.xlu0.b32.cont [15/16] (narrow) %v2794_v1, 8 }
 0x365   : > { %883 = vxpose.xlu0.b32.end [16/16] (narrow) %v2797_v62, 8 }
 0x3a5   : > { %v884_v6 = vpop.trf.xlu0 }
 0x3a6   : > { %1849 = vmatmul.mubr.f32.vlgmr.msra.gmra.mxu0 %v884_v6 }
 0x466   : > { %v966_v18 = vpop.f32.mrf.mxu0 }
 0x467   : > { %v970_v3 = vsub.f32 %v2582_v31, %v966_v18  ;;  %v1027_v18 = vld [vmem:[#allocation4 + $0x10] sm:$0xff] }
 0x468   : > { %v1850_v33 = vpop.f32.mrf.mxu0 }
 0x469   : > { %v971_v61 = vmul.f32 1.442695, %v970_v3 }
 0x46b   : > { %1962 = vpow2.f32 %v971_v61 }
 0x478   : > { %v1963_v57 = vpop.eup %1962 }
 0x479   : > { %v976_v49 = vrot.slane %v1963_v57, %v3141_v51 }
 0x47b   : > { %v977_v47 = vmul.f32 %v2478_v10, %v976_v49  ;;  %v978_v44 = vmul.f32 %v2491_v11, %v976_v49  ;;  %v979_v43 = vmul.f32 %v2455_v7, %v976_v49  ;;  %v980_v6 = vmul.f32 %v2434_v4, %v976_v49  ;;  %v1025_v7 = vld [vmem:[#allocation4] sm:$0xff] }
 0x47c   : > { %v981_v33 = vmul.f32 %v2416_v2, %v976_v49  ;;  %v982_v61 = vmul.f32 %v2397_v0, %v976_v49  ;;  %v983_v24 = vmul.f32 %v2392_v63, %v976_v49  ;;  %v987_v51 = vmul.f32 %v2300_v48, %v976_v49 }
 0x47d   : > { %993 = vadd.xlane.f32.xlu1 %v977_v47  ;;  %v984_v47 = vmul.f32 %v2371_v60, %v976_v49  ;;  %v988_v57 = vmul.f32 %v2282_v46, %v976_v49  ;;  %v989_v0 = vmul.f32 %v2277_v45, %v976_v49  ;;  %v990_v63 = vmul.f32 %v2255_v42, %v976_v49 }
 0x47e   : > { %v991_v60 = vmul.f32 %v2238_v39, %v976_v49  ;;  %v3143_v46 = vsub.f32 %v2666_v28, %v2680_v36  ;;  %v3144_v42 = vsub.f32 %v2658_v22, %v2664_v27  ;;  %v3145_v39 = vsub.f32 %v2668_v29, %v2683_v38  ;;  %v1026_v27 = vld [vmem:[#allocation4 + $0x8] sm:$0xff] }
 0x47f   : > { %v3147_v10 = vsub.f32 %v2687_v55, %v2702_v13  ;;  %v3148_v29 = vsub.f32 %v2704_v14, %v2718_v20  ;;  %v3149_v55 = vsub.f32 %v2706_v15, %v2721_v23  ;;  %v3150_v20 = vsub.f32 %v2723_v25, %v2737_v19 }
 0x480   : > { %v1059_v2 = vmul.f32 1.442695, %v3143_v46  ;;  %v1061_v45 = vmul.f32 1.442695, %v3144_v42  ;;  %v3151_v23 = vsub.f32 %v2725_v41, %v2740_v17  ;;  %v3152_v19 = vsub.f32 %v2742_v16, %v2756_v32 }
 0x481   : > { %995 = vadd.xlane.f32.xlu1 %v978_v44  ;;  %v985_v44 = vmul.f32 %v2336_v53, %v976_v49  ;;  %v992_v53 = vmul.f32 %v2229_v37, %v976_v49  ;;  %v1063_v37 = vmul.f32 1.442695, %v3145_v39  ;;  %v1067_v11 = vmul.f32 1.442695, %v3147_v10  ;;  %v1031_v39 = vld [vmem:[#allocation4 + $0x30] sm:$0xff] }
 0x482   : > { %v1069_v36 = vmul.f32 1.442695, %v3148_v29  ;;  %v1071_v13 = vmul.f32 1.442695, %v3149_v55  ;;  %v1077_v46 = vmul.f32 1.442695, %v3152_v19  ;;  %v3153_v41 = vsub.f32 %v2744_v52, %v2759_v56 }
 0x483   : > { %v3154_v16 = vsub.f32 %v2761_v30, %v2775_v8  ;;  %v3155_v52 = vsub.f32 %v2763_v59, %v2778_v9  ;;  %v3156_v30 = vsub.f32 %v2780_v5, %v2794_v1  ;;  %v1035_v55 = vld [vmem:[#allocation4 + $0x50] sm:$0xff]  ;;  %v3157_v59 = vsub.f32 %v2782_v58, %v2797_v62  ;;  %v1040_v19 = vld [vmem:[#allocation4 + $0x78] sm:$0xff] }
 0x485   : > { %997 = vadd.xlane.f32.xlu1 %v979_v43  ;;  %v986_v43 = vmul.f32 %v2318_v50, %v976_v49  ;;  %v3142_v50 = vsub.f32 %v2656_v21, %v2661_v26  ;;  %v3146_v49 = vsub.f32 %v2685_v54, %v2699_v12  ;;  %v1081_v10 = vmul.f32 1.442695, %v3154_v16 }
 0x487   : > { %v1057_v48 = vmul.f32 1.442695, %v3142_v50  ;;  %v1065_v3 = vmul.f32 1.442695, %v3146_v49 }
 0x489   : > { %999 = vadd.xlane.f32.xlu1 %v980_v6  ;;  %1964 = vpow2.f32 %v1057_v48  ;;  %v1030_v48 = vld [vmem:[#allocation4 + $0x28] sm:$0xff] }
 0x48a   : > { %1966 = vpow2.f32 %v1059_v2 }
 0x48b   : > { %1968 = vpow2.f32 %v1061_v45 }
 0x48c   : > { %1970 = vpow2.f32 %v1063_v37  ;;  %v1079_v37 = vmul.f32 1.442695, %v3153_v41 }
 0x48d   : > { %1001 = vadd.xlane.f32.xlu1 %v981_v33  ;;  %1972 = vpow2.f32 %v1065_v3 }
 0x48e   : > { %1974 = vpow2.f32 %v1067_v11 }
 0x48f   : > { %1976 = vpow2.f32 %v1069_v36 }
 0x490   : > { %1978 = vpow2.f32 %v1071_v13  ;;  %v1087_v13 = vmul.f32 1.442695, %v3157_v59 }
 0x491   : > { %1003 = vadd.xlane.f32.xlu1 %v982_v61 }
 0x495   : > { %1005 = vadd.xlane.f32.xlu1 %v983_v24 }
 0x496   : > { %v1965_v4 = vpop.eup %1964 }
 0x497   : > { %v1089_v21 = vmul.f32 %v1965_v4, %v1025_v7  ;;  %v1967_v22 = vpop.eup %1966  ;;  %v1032_v7 = vld [vmem:[#allocation4 + $0x38] sm:$0xff] }
 0x498   : > { %v1090_v38 = vmul.f32 %v1967_v22, %v1026_v27  ;;  %v1969_v54 = vpop.eup %1968  ;;  %v1083_v27 = vmul.f32 1.442695, %v3155_v52 }
 0x499   : > { %1007 = vadd.xlane.f32.xlu1 %v984_v47  ;;  %v1091_v33 = vmul.f32 %v1969_v54, %v1027_v18  ;;  %v1971_v61 = vpop.eup %1970  ;;  %v1028_v47 = vld [vmem:[#allocation4 + $0x18] sm:$0xff]  ;;  %v1085_v54 = vmul.f32 1.442695, %v3156_v30 }
 0x49d   : > { %1009 = vadd.xlane.f32.xlu1 %v985_v44  ;;  %v1073_v44 = vmul.f32 1.442695, %v3150_v20 }
 0x49f   : > { %1980 = vpow2.f32 %v1073_v44  ;;  %v1037_v44 = vld [vmem:[#allocation4 + $0x60] sm:$0xff] }
 0x4a1   : > { %1011 = vadd.xlane.f32.xlu1 %v986_v43  ;;  %v1092_v43 = vmul.f32 %v1971_v61, %v1028_v47  ;;  %v1036_v47 = vld [vmem:[#allocation4 + $0x58] sm:$0xff] }
 0x4a5   : > { %1013 = vadd.xlane.f32.xlu1 %v987_v51  ;;  %v1973_v51 = vpop.eup %1972 }
 0x4a9   : > { %1015 = vadd.xlane.f32.xlu1 %v988_v57 }
 0x4ad   : > { %1017 = vadd.xlane.f32.xlu1 %v989_v0  ;;  %v1029_v0 = vld [vmem:[#allocation4 + $0x20] sm:$0xff] }
 0x4b1   : > { %1019 = vadd.xlane.f32.xlu1 %v990_v63  ;;  %v1075_v63 = vmul.f32 1.442695, %v3151_v23 }
 0x4b3   : > { %1982 = vpow2.f32 %v1075_v63 }
 0x4b4   : > { %1984 = vpow2.f32 %v1077_v46 }
 0x4b5   : > { %1021 = vadd.xlane.f32.xlu1 %v991_v60  ;;  %v1093_v60 = vmul.f32 %v1973_v51, %v1029_v0  ;;  %1986 = vpow2.f32 %v1079_v37 }
 0x4b6   : > { %1988 = vpow2.f32 %v1081_v10 }
 0x4b7   : > { %1990 = vpow2.f32 %v1083_v27 }
 0x4b8   : > { %1992 = vpow2.f32 %v1085_v54 }
 0x4b9   : > { %1023 = vadd.xlane.f32.xlu1 %v992_v53  ;;  %v1975_v53 = vpop.eup %1974  ;;  %1994 = vpow2.f32 %v1087_v13 }
 0x4ba   : > { %v1094_v2 = vmul.f32 %v1975_v53, %v1030_v48  ;;  %v1977_v42 = vpop.eup %1976 }
 0x4bb   : > { %v1095_v49 = vmul.f32 %v1977_v42, %v1031_v39  ;;  %v1979_v3 = vpop.eup %1978 }
 0x4bc   : > { %v1096_v11 = vmul.f32 %v1979_v3, %v1032_v7 }
 0x506   : > { %v994_v26 = vpop.xlane.xlu1 %993 }
 0x507   : > { %v1105_v28 = vadd.f32 %v1089_v21, %v994_v26  ;;  %v1981_v21 = vpop.eup %1980  ;;  %v1033_v26 = vld [vmem:[#allocation4 + $0x40] sm:$0xff] }
 0x508   : > { %v1983_v29 = vpop.eup %1982 }
 0x509   : > { %1122 = vst.msk [vmem:[#allocation4] sm:$0xff] %vm1121_vm8, %v1105_v28  ;;  %v1097_v28 = vmul.f32 %v1981_v21, %v1033_v26  ;;  %v1985_v18 = vpop.eup %1984 }
 0x50a   : > { %v996_v12 = vpop.xlane.xlu1 %995  ;;  %v1987_v61 = vpop.eup %1986 }
 0x50b   : > { %v1106_v6 = vadd.f32 %v1090_v38, %v996_v12  ;;  %v1034_v38 = vld [vmem:[#allocation4 + $0x48] sm:$0xff]  ;;  %v1100_v5 = vmul.f32 %v1987_v61, %v1036_v47 }
 0x50c   : > { %v1098_v12 = vmul.f32 %v1983_v29, %v1034_v38 }
 0x50d   : > { %1123 = vst.msk [vmem:[#allocation4 + $0x8] sm:$0xff] %vm1121_vm8, %v1106_v6 }
 0x50e   : > { %v998_v24 = vpop.xlane.xlu1 %997 }
 0x50f   : > { %v1107_v14 = vadd.f32 %v1091_v33, %v998_v24  ;;  %v1099_v33 = vmul.f32 %v1985_v18, %v1035_v55 }
 0x511   : > { %1124 = vst.msk [vmem:[#allocation4 + $0x10] sm:$0xff] %vm1121_vm8, %v1107_v14  ;;  %v1989_v14 = vpop.eup %1988 }
 0x512   : > { %v1000_v57 = vpop.xlane.xlu1 %999  ;;  %v1101_v51 = vmul.f32 %v1989_v14, %v1037_v44  ;;  %v1991_v62 = vpop.eup %1990 }
 0x513   : > { %v1108_v15 = vadd.f32 %v1092_v43, %v1000_v57  ;;  %v1038_v57 = vld [vmem:[#allocation4 + $0x68] sm:$0xff]  ;;  %v1993_v23 = vpop.eup %1992 }
 0x514   : > { %v1995_v48 = vpop.eup %1994 }
 0x515   : > { %1125 = vst.msk [vmem:[#allocation4 + $0x18] sm:$0xff] %vm1121_vm8, %v1108_v15  ;;  %v1102_v15 = vmul.f32 %v1991_v62, %v1038_v57 }
 0x516   : > { %v1002_v50 = vpop.xlane.xlu1 %1001 }
 0x517   : > { %v1109_v25 = vadd.f32 %v1093_v60, %v1002_v50  ;;  %v1039_v60 = vld [vmem:[#allocation4 + $0x70] sm:$0xff] }
 0x518   : > { %v1103_v50 = vmul.f32 %v1993_v23, %v1039_v60 }
 0x519   : > { %1126 = vst.msk [vmem:[#allocation4 + $0x20] sm:$0xff] %vm1121_vm8, %v1109_v25 }
 0x51a   : > { %v1004_v45 = vpop.xlane.xlu1 %1003 }
 0x51b   : > { %v1110_v17 = vadd.f32 %v1094_v2, %v1004_v45  ;;  %v1104_v2 = vmul.f32 %v1995_v48, %v1040_v19 }
 0x51d   : > { %1127 = vst.msk [vmem:[#allocation4 + $0x28] sm:$0xff] %vm1121_vm8, %v1110_v17 }
 0x51e   : > { %v1006_v4 = vpop.xlane.xlu1 %1005 }
 0x51f   : > { %v1111_v32 = vadd.f32 %v1095_v49, %v1006_v4 }
 0x521   : > { %1128 = vst.msk [vmem:[#allocation4 + $0x30] sm:$0xff] %vm1121_vm8, %v1111_v32 }
 0x522   : > { %v1008_v22 = vpop.xlane.xlu1 %1007 }
 0x523   : > { %v1112_v56 = vadd.f32 %v1096_v11, %v1008_v22 }
 0x525   : > { %1129 = vst.msk [vmem:[#allocation4 + $0x38] sm:$0xff] %vm1121_vm8, %v1112_v56 }
 0x526   : > { %v1010_v36 = vpop.xlane.xlu1 %1009 }
 0x527   : > { %v1113_v8 = vadd.f32 %v1097_v28, %v1010_v36 }
 0x529   : > { %1130 = vst.msk [vmem:[#allocation4 + $0x40] sm:$0xff] %vm1121_vm8, %v1113_v8 }
 0x52a   : > { %v1012_v6 = vpop.xlane.xlu1 %1011 }
 0x52b   : > { %v1114_v9 = vadd.f32 %v1098_v12, %v1012_v6 }
 0x52d   : > { %1131 = vst.msk [vmem:[#allocation4 + $0x48] sm:$0xff] %vm1121_vm8, %v1114_v9 }
 0x52e   : > { %v1014_v24 = vpop.xlane.xlu1 %1013 }
 0x52f   : > { %v1115_v1 = vadd.f32 %v1099_v33, %v1014_v24 }
 0x531   : > { %1132 = vst.msk [vmem:[#allocation4 + $0x50] sm:$0xff] %vm1121_vm8, %v1115_v1 }
 0x532   : > { %v1016_v20 = vpop.xlane.xlu1 %1015 }
 0x533   : > { %v1116_v43 = vadd.f32 %v1100_v5, %v1016_v20 }
 0x535   : > { %1133 = vst.msk [vmem:[#allocation4 + $0x58] sm:$0xff] %vm1121_vm8, %v1116_v43 }
 0x536   : > { %v1018_v58 = vpop.xlane.xlu1 %1017 }
 0x537   : > { %v1117_v0 = vadd.f32 %v1101_v51, %v1018_v58 }
 0x539   : > { %1134 = vst.msk [vmem:[#allocation4 + $0x60] sm:$0xff] %vm1121_vm8, %v1117_v0 }
 0x53a   : > { %v1020_v63 = vpop.xlane.xlu1 %1019 }
 0x53b   : > { %v1118_v53 = vadd.f32 %v1102_v15, %v1020_v63 }
 0x53d   : > { %1135 = vst.msk [vmem:[#allocation4 + $0x68] sm:$0xff] %vm1121_vm8, %v1118_v53 }
 0x53e   : > { %v1022_v25 = vpop.xlane.xlu1 %1021 }
 0x53f   : > { %v1119_v46 = vadd.f32 %v1103_v50, %v1022_v25 }
 0x541   : > { %1136 = vst.msk [vmem:[#allocation4 + $0x70] sm:$0xff] %vm1121_vm8, %v1119_v46 }
 0x542   : > { %v1024_v42 = vpop.xlane.xlu1 %1023 }
 0x543   : > { %v1120_v45 = vadd.f32 %v1104_v2, %v1024_v42 }
 0x545   : > { %1137 = vst.msk [vmem:[#allocation4 + $0x78] sm:$0xff] %vm1121_vm8, %v1120_v45 }
 0x546 PF: > { %p1567_p6 = scmp.ne.s32.totalorder %s2051_s15, 1 }
 0x548   : > { %1158 = sbr.rel (%p1567_p6) target bundleno = 1703 (0x6a7), region = 48 }
 0x54d   : > { %v1159_v39 = vld [vmem:[#allocation3] sm:$0xff]  ;;  %v1160_v41 = vld [vmem:[#allocation3 + $0x8] sm:$0xff]  ;;  %v2069_v3 = vmov 0.0   ;;  %v2070_v4 = vmov 1.0   ;;  %vm3158_vm7 = vnez %v3090_v34  ;;  %v1161_v32 = vld [vmem:[#allocation3 + $0x10] sm:$0xff]  ;;  %vm3159_vm0 = vnez %v3092_v35 }
 0x54e   : > { %v1277_v17 = vld [vmem:[#allocation4] sm:$0xff]  ;;  %v1278_v49 = vld [vmem:[#allocation4 + $0x8] sm:$0xff]  ;;  %1851 = vmatprep.subr.mxu0 %v2069_v3  ;;  %1886 = vmatprep.subr.mxu1 %v2069_v3  ;;  %v1279_v16 = vld [vmem:[#allocation4 + $0x10] sm:$0xff]  ;;  %vm3160_vm6 = vnez %v3094_v40 }
 0x54f   : > { %v1996_v37 = vpack.i.bf16 %v1277_v17, %v1159_v39  ;;  %1852 = vmatpush3.msk.msra.mxu0 %vm3158_vm7, %v2070_v4  ;;  %1887 = vmatpush3.msk.msra.mxu1 %vm3158_vm7, %v2070_v4  ;;  %v1998_v7 = vpack.i.bf16 %v1278_v49, %v1160_v41  ;;  %v2000_v34 = vpack.i.bf16 %v1279_v16, %v1161_v32  ;;  %v1162_v10 = vld [vmem:[#allocation3 + $0x18] sm:$0xff]  ;;  %v3161_v35 = vld [vmem:[#allocation5_spill] sm:$0xff]  ;;  %v1164_v27 = vld [vmem:[#allocation3 + $0x28] sm:$0xff] }
 0x550   : > { %1853 = vmatprep.subr.mxu0 %v2069_v3  ;;  %1888 = vmatprep.subr.mxu1 %v2069_v3  ;;  %v1280_v11 = vld [vmem:[#allocation4 + $0x18] sm:$0xff]  ;;  %vm3162_vm2 = vnez %v3161_v35  ;;  %v1163_v22 = vld [vmem:[#allocation3 + $0x20] sm:$0xff]  ;;  %v1282_v28 = vld [vmem:[#allocation4 + $0x28] sm:$0xff] }
 0x551   : > { %1997 = vxpose.xlu0.b32.start [1/16] (narrow) %v1996_v37, 8  ;;  %1854 = vmatpush3.msk.msra.mxu0 %vm3159_vm0, %v2070_v4  ;;  %v2002_v40 = vpack.i.bf16 %v1280_v11, %v1162_v10  ;;  %v1281_v26 = vld [vmem:[#allocation4 + $0x20] sm:$0xff]  ;;  %v2006_v38 = vpack.i.bf16 %v1282_v28, %v1164_v27  ;;  %v1165_v8 = vld [vmem:[#allocation3 + $0x30] sm:$0xff]  ;;  %v1166_v6 = vld [vmem:[#allocation3 + $0x38] sm:$0xff] }
 0x552   : > { %1889 = vmatpush3.msk.msra.mxu1 %vm3159_vm0, %v2070_v4  ;;  %1855 = vmatprep.subr.mxu0 %v2069_v3  ;;  %v2004_v52 = vpack.i.bf16 %v1281_v26, %v1163_v22  ;;  %v1283_v30 = vld [vmem:[#allocation4 + $0x30] sm:$0xff]  ;;  %v1284_v55 = vld [vmem:[#allocation4 + $0x38] sm:$0xff]  ;;  %v1167_v33 = vld [vmem:[#allocation3 + $0x40] sm:$0xff] }
 0x553   : > { %1890 = vmatprep.subr.mxu1 %v2069_v3  ;;  %1856 = vmatpush3.msk.msra.mxu0 %vm3160_vm6, %v2070_v4  ;;  %v2008_v18 = vpack.i.bf16 %v1283_v30, %v1165_v8  ;;  %v2010_v59 = vpack.i.bf16 %v1284_v55, %v1166_v6  ;;  %v1285_v61 = vld [vmem:[#allocation4 + $0x40] sm:$0xff]  ;;  %v1168_v1 = vld [vmem:[#allocation3 + $0x48] sm:$0xff]  ;;  %v1169_v43 = vld [vmem:[#allocation3 + $0x50] sm:$0xff] }
 0x554   : > { %1891 = vmatpush3.msk.msra.mxu1 %vm3160_vm6, %v2070_v4  ;;  %1857 = vmatprep.subr.mxu0 %v2069_v3  ;;  %v2012_v47 = vpack.i.bf16 %v1285_v61, %v1167_v33  ;;  %v1286_v5 = vld [vmem:[#allocation4 + $0x48] sm:$0xff]  ;;  %v1287_v51 = vld [vmem:[#allocation4 + $0x50] sm:$0xff]  ;;  %v3174_v62 = vld [vmem:[#allocation16_spill] sm:$0xff] }
 0x555   : > { %1999 = vxpose.xlu0.b32.cont [2/16] (narrow) %v1998_v7, 8  ;;  %1892 = vmatprep.subr.mxu1 %v2069_v3  ;;  %v2014_v44 = vpack.i.bf16 %v1286_v5, %v1168_v1  ;;  %v2016_v58 = vpack.i.bf16 %v1287_v51, %v1169_v43  ;;  %v1170_v57 = vld [vmem:[#allocation3 + $0x58] sm:$0xff]  ;;  %v1171_v23 = vld [vmem:[#allocation3 + $0x60] sm:$0xff]  ;;  %v1172_v53 = vld [vmem:[#allocation3 + $0x68] sm:$0xff] }
 0x556   : > { %1858 = vmatpush3.msk.msra.mxu0 %vm3162_vm2, %v2070_v4  ;;  %1893 = vmatpush3.msk.msra.mxu1 %vm3162_vm2, %v2070_v4  ;;  %v1288_v0 = vld [vmem:[#allocation4 + $0x58] sm:$0xff]  ;;  %v1289_v63 = vld [vmem:[#allocation4 + $0x60] sm:$0xff]  ;;  %v1290_v50 = vld [vmem:[#allocation4 + $0x68] sm:$0xff] }
 0x557   : > { %1859 = vmatprep.subr.mxu0 %v2069_v3  ;;  %1894 = vmatprep.subr.mxu1 %v2069_v3  ;;  %v2018_v15 = vpack.i.bf16 %v1288_v0, %v1170_v57  ;;  %v2020_v60 = vpack.i.bf16 %v1289_v63, %v1171_v23  ;;  %v2022_v48 = vpack.i.bf16 %v1290_v50, %v1172_v53  ;;  %v1173_v25 = vld [vmem:[#allocation3 + $0x70] sm:$0xff]  ;;  %v1174_v2 = vld [vmem:[#allocation3 + $0x78] sm:$0xff] }
 0x558   : > { %1860 = vmatpush3.msk.msra.mxu0 %vm2264_vm9, %v2070_v4  ;;  %1895 = vmatpush3.msk.msra.mxu1 %vm2264_vm9, %v2070_v4  ;;  %vm3175_vm9 = vnez %v3174_v62  ;;  %v1291_v19 = vld [vmem:[#allocation4 + $0x70] sm:$0xff]  ;;  %v1292_v42 = vld [vmem:[#allocation4 + $0x78] sm:$0xff] }
 0x559   : > { %2001 = vxpose.xlu0.b32.cont [3/16] (narrow) %v2000_v34, 8  ;;  %1861 = vmatprep.subr.mxu0 %v2069_v3  ;;  %v2024_v46 = vpack.i.bf16 %v1291_v19, %v1173_v25  ;;  %v2026_v45 = vpack.i.bf16 %v1292_v42, %v1174_v2 }
 0x55a   : > { %1896 = vmatprep.subr.mxu1 %v2069_v3  ;;  %1862 = vmatpush3.msk.msra.mxu0 %vm2286_vm10, %v2070_v4 }
 0x55b   : > { %1897 = vmatpush3.msk.msra.mxu1 %vm2286_vm10, %v2070_v4  ;;  %1863 = vmatprep.subr.mxu0 %v2069_v3  ;;  %vm2071_vm10 = vmmov 0  }
 0x55c   : > { %1898 = vmatprep.subr.mxu1 %v2069_v3  ;;  %1864 = vmatpush3.msk.msra.mxu0 %vm2304_vm12, %v2070_v4 }
 0x55d   : > { %2003 = vxpose.xlu0.b32.cont [4/16] (narrow) %v2002_v40, 8  ;;  %1899 = vmatpush3.msk.msra.mxu1 %vm2304_vm12, %v2070_v4 }
 0x55e   : > { %1865 = vmatprep.subr.mxu0 %v2069_v3  ;;  %1900 = vmatprep.subr.mxu1 %v2069_v3 }
 0x55f   : > { %1866 = vmatpush3.msk.msra.mxu0 %vm2322_vm14, %v2070_v4  ;;  %1901 = vmatpush3.msk.msra.mxu1 %vm2322_vm14, %v2070_v4 }
 0x560   : > { %1867 = vmatprep.subr.mxu0 %v2069_v3  ;;  %1902 = vmatprep.subr.mxu1 %v2069_v3 }
 0x561   : > { %2005 = vxpose.xlu0.b32.cont [5/16] (narrow) %v2004_v52, 8  ;;  %1868 = vmatpush3.msk.msra.mxu0 %vm2350_vm15, %v2070_v4 }
 0x562   : > { %1903 = vmatpush3.msk.msra.mxu1 %vm2350_vm15, %v2070_v4  ;;  %1869 = vmatprep.subr.mxu0 %v2069_v3 }
 0x563   : > { %1904 = vmatprep.subr.mxu1 %v2069_v3  ;;  %1870 = vmatpush3.msk.msra.mxu0 %vm2374_vm1, %v2070_v4 }
 0x564   : > { %1905 = vmatpush3.msk.msra.mxu1 %vm2374_vm1, %v2070_v4  ;;  %1871 = vmatprep.subr.mxu0 %v2069_v3 }
 0x565   : > { %2007 = vxpose.xlu0.b32.cont [6/16] (narrow) %v2006_v38, 8  ;;  %1906 = vmatprep.subr.mxu1 %v2069_v3 }
 0x566   : > { %1872 = vmatpush3.msk.msra.mxu0 %vm2379_vm3, %v2070_v4  ;;  %1907 = vmatpush3.msk.msra.mxu1 %vm2379_vm3, %v2070_v4 }
 0x567   : > { %1873 = vmatprep.subr.mxu0 %v2069_v3  ;;  %1908 = vmatprep.subr.mxu1 %v2069_v3 }
 0x568   : > { %1874 = vmatpush3.msk.msra.mxu0 %vm2401_vm5, %v2070_v4  ;;  %1909 = vmatpush3.msk.msra.mxu1 %vm2401_vm5, %v2070_v4 }
 0x569   : > { %2009 = vxpose.xlu0.b32.cont [7/16] (narrow) %v2008_v18, 8  ;;  %1875 = vmatprep.subr.mxu0 %v2069_v3 }
 0x56a   : > { %1910 = vmatprep.subr.mxu1 %v2069_v3  ;;  %1876 = vmatpush3.msk.msra.mxu0 %vm2420_vm11, %v2070_v4 }
 0x56b   : > { %1911 = vmatpush3.msk.msra.mxu1 %vm2420_vm11, %v2070_v4  ;;  %1877 = vmatprep.subr.mxu0 %v2069_v3 }
 0x56c   : > { %1912 = vmatprep.subr.mxu1 %v2069_v3  ;;  %1878 = vmatpush3.msk.msra.mxu0 %vm2438_vm13, %v2070_v4 }
 0x56d   : > { %2011 = vxpose.xlu0.b32.cont [8/16] (narrow) %v2010_v59, 8  ;;  %1913 = vmatpush3.msk.msra.mxu1 %vm2438_vm13, %v2070_v4 }
 0x56e   : > { %1879 = vmatprep.subr.mxu0 %v2069_v3  ;;  %1914 = vmatprep.subr.mxu1 %v2069_v3 }
 0x56f   : > { %1880 = vmatpush3.msk.msra.mxu0 %vm2471_vm4, %v2070_v4  ;;  %1915 = vmatpush3.msk.msra.mxu1 %vm2471_vm4, %v2070_v4 }
 0x570   : > { %1881 = vmatprep.subr.mxu0 %v2069_v3  ;;  %1916 = vmatprep.subr.mxu1 %v2069_v3 }
 0x571   : > { %2013 = vxpose.xlu0.b32.cont [9/16] (narrow) %v2012_v47, 8  ;;  %1882 = vmatpush3.msk.msra.mxu0 %vm3175_vm9, %v2070_v4 }
 0x572   : > { %1883 = vmatprep.mubr.msk.f32.mxu0 %vm2071_vm10, %v2069_v3  ;;  %1917 = vmatpush3.msk.msra.mxu1 %vm3175_vm9, %v2070_v4 }
 0x573   : > { %1918 = vmatprep.mubr.msk.f32.mxu1 %vm2071_vm10, %v2069_v3 }
 0x575   : > { %2015 = vxpose.xlu0.b32.cont [10/16] (narrow) %v2014_v44, 8 }
 0x579   : > { %2017 = vxpose.xlu0.b32.cont [11/16] (narrow) %v2016_v58, 8 }
 0x57d   : > { %2019 = vxpose.xlu0.b32.cont [12/16] (narrow) %v2018_v15, 8 }
 0x581   : > { %2021 = vxpose.xlu0.b32.cont [13/16] (narrow) %v2020_v60, 8 }
 0x585   : > { %2023 = vxpose.xlu0.b32.cont [14/16] (narrow) %v2022_v48, 8 }
 0x589   : > { %2025 = vxpose.xlu0.b32.cont [15/16] (narrow) %v2024_v46, 8 }
 0x58d   : > { %2027 = vxpose.xlu0.b32.end [16/16] (narrow) %v2026_v45, 8 }
 0x5cd   : > { %v2028_v39 = vpop.trf.xlu0 }
 0x5ce   : > { %v2032_v17 = vunpack.i.h.bf16 %v2028_v39  ;;  %v2029_v41 = vunpack.i.l.bf16 %v2028_v39 }
 0x5d0   : > { %1884 = vmatmul.mubr.f32.vlgmr.msra.gmra.mxu0 %v2029_v41  ;;  %1919 = vmatmul.mubr.f32.vlgmr.msra.gmra.mxu1 %v2032_v17 }
 0x690   : > { %v1273_v37 = vpop.f32.mrf.mxu0  ;;  %v1391_v49 = vpop.f32.mrf.mxu1 }
 0x691   : > { %v1395_v3 = vsub.f32 %v2582_v31, %v1273_v37  ;;  %vm1398_vm4 = vcmp.gt.f32.partialorder %v1391_v49, 0.0 }
 0x692   : > { %v1399_v4 = vsel %vm1398_vm4, %v1391_v49, 1.0  ;;  %v1885_v7 = vpop.f32.mrf.mxu0  ;;  %v1920_v32 = vpop.f32.mrf.mxu1 }
 0x693   : > { %v1396_v16 = vmul.f32 1.442695, %v1395_v3  ;;  %2033 = vrcp.f32 %v1399_v4 }
 0x695   : > { %2035 = vpow2.f32 %v1396_v16 }
 0x6a0   : > { %v2034_v34 = vpop.eup %2033 }
 0x6a2   : > { %v2036_v10 = vpop.eup %2035 }
 0x6a3   : > { %v1401_v11 = vmul.f32 %v2036_v10, %v2034_v34 }
 0x6a5   : > { %v1402_v35 = vsel %vm1398_vm4, %v1401_v11, 0.0 }
 0x6a6   : > { %1403 = vst [vmem:[%s3047_s4] sm:$0x1] %v1402_v35 }
 0x6a7 PF: > { %s14_s17 = sadd.s32 1, %s2059_s17   ;;  %s3176_s15 = smov %s2055_s16 }
 0x6a8   : > { %p11_p7 = scmp.ge.s32.totalorder %s14_s17, 4   ;;  %s3177_s16 = smov %s3179_s18 }
 0x6aa   :  { %13 = sbr.rel (!%p11_p7) target bundleno = 2 (0x2), region = 81 }

</bundles_post_ra>
